<compile_context>
chip_gen: v7x
topology: tpu7x:2x2x1
jax: 0.10.0
libtpu: 0.0.40
codegen_flags: <defaults>
</compile_context>

<pallas_src>
import numpy as np
import jax
import jax.numpy as jnp
from jax.experimental import pallas as pl
from jax.experimental.pallas import tpu as pltpu


# ----------------------------------------------------------------------------
# Fused kernel: BiLSTM recurrence + attention + output Linear.
# Inputs (all VMEM-resident, full arrays; demo-sized):
#   x        [S*B, E]   time-major flattened embedded input (row = t*B + b)
#   wih      [E, 8H]    concat([wih_f, wih_b], axis=1), gate order i,f,g,o per direction
#   whh_f/b  [H, 4H]    hidden->gates weights per direction
#   b        [1, 8H]    concat of combined biases (b_ih + b_hh) per direction
#   w_out    [2H, C]    output Linear weight, pre-transposed
#   b_out    [1, C]
# Outputs:
#   logits   [B, C]
#   attn     [B, S]
# Scratch:
#   lstm_sc  [B, S, 2H] VMEM  bidirectional hidden states
#   hid_sc   [B, 2H]    VMEM  "view quirk" final hidden used as attention query
# ----------------------------------------------------------------------------
def bilstm_attention_kernel(x_ref, wih_ref, whh_f_ref, whh_b_ref, b_ref,
                            w_out_ref, b_out_ref,
                            logits_ref, attn_ref,
                            lstm_sc, hid_sc):
    B, S, twoH = lstm_sc.shape
    H = twoH // 2
    C = w_out_ref.shape[1]

    # (1) Hoisted input projection: one big matmul covering both directions and all
    #     timesteps, instead of 2*S tiny latency-bound MXU pushes in the loop.
    gx = jnp.dot(x_ref[...], wih_ref[...],
                 preferred_element_type=jnp.float32) + b_ref[...]          # [S*B, 8H]

    whh_f = whh_f_ref[...]
    whh_b = whh_b_ref[...]

    def gate_act(gates, c):
        i = jax.nn.sigmoid(gates[:, 0:H])
        f = jax.nn.sigmoid(gates[:, H:2 * H])
        g = jnp.tanh(gates[:, 2 * H:3 * H])
        o = jax.nn.sigmoid(gates[:, 3 * H:4 * H])
        c_new = f * c + i * g
        return o * jnp.tanh(c_new), c_new

    h_f = jnp.zeros((B, H), jnp.float32)
    c_f = jnp.zeros((B, H), jnp.float32)
    h_b = jnp.zeros((B, H), jnp.float32)
    c_b = jnp.zeros((B, H), jnp.float32)

    # (2) Fully unrolled recurrence (S is a small compile-time constant); forward and
    #     backward directions interleaved in the same iteration.
    for t in range(S):
        tb = S - 1 - t
        gx_f = gx[t * B:(t + 1) * B, 0:4 * H]             # [B, 4H]  fwd inputs @ time t
        gx_b = gx[tb * B:(tb + 1) * B, 4 * H:8 * H]       # [B, 4H]  bwd inputs @ time S-1-t
        gates_f = gx_f + jnp.dot(h_f, whh_f, preferred_element_type=jnp.float32)
        gates_b = gx_b + jnp.dot(h_b, whh_b, preferred_element_type=jnp.float32)
        h_f, c_f = gate_act(gates_f, c_f)
        h_b, c_b = gate_act(gates_b, c_b)
        lstm_sc[:, t:t + 1, 0:H] = h_f[:, None, :]        # forward half of time t
        lstm_sc[:, tb:tb + 1, H:twoH] = h_b[:, None, :]   # backward half of time S-1-t

    # (3) Reproduce PyTorch's final_hidden_state.view(-1, 2H) (row-major flatten of
    #     [2, B, H]) without an in-kernel reshape: hidden[b] = [F[2b] | F[2b+1]]
    #     with F = [h_f rows ; h_b rows].
    for b in range(B):
        for j, r in enumerate((2 * b, 2 * b + 1)):
            piece = h_f[r:r + 1, :] if r < B else h_b[r - B:r - B + 1, :]
            hid_sc[b:b + 1, j * H:(j + 1) * H] = piece

    lstm_out = lstm_sc[...]                               # [B, S, 2H]
    hidden3 = hid_sc[...][:, None, :]                     # [B, 1, 2H]

    # (4) Attention on the MXU (flash-style batched contractions).
    scores = jnp.einsum('blk,bsk->bls', hidden3, lstm_out,
                        preferred_element_type=jnp.float32)               # [B, 1, S]
    m = jnp.max(scores, axis=-1, keepdims=True)
    e = jnp.exp(scores - m)
    denom = jnp.sum(e, axis=-1, keepdims=True)
    # Exact reciprocal (approx=True would loosen the 1e-4 agreement with the reference).
    soft = e * pl.reciprocal(denom)                                       # [B, 1, S]
    context = jnp.einsum('bls,bsk->blk', soft, lstm_out,
                         preferred_element_type=jnp.float32)              # [B, 1, 2H]

    # (5) Output Linear, batched so no non-leading unit dim is squeezed in-kernel.
    w3 = jnp.broadcast_to(w_out_ref[...][None, :, :], (B, twoH, C))       # [B, 2H, C]
    logits3 = jnp.einsum('blk,bkc->blc', context, w3,
                         preferred_element_type=jnp.float32) + b_out_ref[...][None, :, :]

    for b in range(B):
        logits_ref[b:b + 1, :] = logits3[b]               # [1, C]
        attn_ref[b:b + 1, :] = soft[b]                    # [1, S]


# ----------------------------------------------------------------------------
# Wrapper: embedding gather + weight packing in plain JAX, single fused pallas_call.
# ----------------------------------------------------------------------------
def bilstm_attention_forward(X, params):
    emb = params["embedding"][X]                          # [B, S, E]  (plain-JAX gather)
    B, S, E = emb.shape
    H = params["whh_f"].shape[0]
    C = params["w_out"].shape[0]

    # Time-major flatten so the kernel's hoisted input projection is one matmul.
    x2d = jnp.transpose(emb, (1, 0, 2)).reshape(S * B, E).astype(jnp.float32)
    wih = jnp.concatenate([params["wih_f"], params["wih_b"]], axis=1)     # [E, 8H]
    b_cat = jnp.concatenate([params["b_f"], params["b_b"]], axis=1)       # [1, 8H]
    w_out_t = jnp.transpose(params["w_out"])                              # [2H, C]

    vmem = pl.BlockSpec(memory_space=pltpu.MemorySpace.VMEM)

    logits, attn = pl.pallas_call(
        bilstm_attention_kernel,
        out_shape=(jax.ShapeDtypeStruct((B, C), jnp.float32),
                   jax.ShapeDtypeStruct((B, S), jnp.float32)),
        in_specs=[vmem] * 7,
        out_specs=(vmem, vmem),
        scratch_shapes=[pltpu.VMEM((B, S, 2 * H), jnp.float32),
                        pltpu.VMEM((B, 2 * H), jnp.float32)],
    )(x2d, wih, params["whh_f"], params["whh_b"], b_cat, w_out_t, params["b_out"])

    return logits, attn


# ----------------------------------------------------------------------------
# Pure-JAX reference (same math as the PyTorch forward) for verification.
# ----------------------------------------------------------------------------
def reference_forward(X, params):
    emb = params["embedding"][X]
    x = jnp.transpose(emb, (1, 0, 2))
    S, B, E = x.shape
    H = params["whh_f"].shape[0]

    def lstm_dir(wih, whh, b, xs):
        def step(carry, x_t):
            h, c = carry
            gates = x_t @ wih + h @ whh + b
            i = jax.nn.sigmoid(gates[:, 0:H])
            f = jax.nn.sigmoid(gates[:, H:2 * H])
            g = jnp.tanh(gates[:, 2 * H:3 * H])
            o = jax.nn.sigmoid(gates[:, 3 * H:4 * H])
            c = f * c + i * g
            h = o * jnp.tanh(c)
            return (h, c), h
        init = (jnp.zeros((B, H), jnp.float32), jnp.zeros((B, H), jnp.float32))
        (hN, _), hs = jax.lax.scan(step, init, xs)
        return hs, hN

    out_f, hNf = lstm_dir(params["wih_f"], params["whh_f"], params["b_f"], x)
    out_b_rev, hNb = lstm_dir(params["wih_b"], params["whh_b"], params["b_b"], x[::-1])
    out_b = out_b_rev[::-1]

    output = jnp.transpose(jnp.concatenate([out_f, out_b], -1), (1, 0, 2))  # [B,S,2H]
    hidden = jnp.stack([hNf, hNb], 0).reshape(-1, 2 * H)
    scores = jnp.einsum("bsk,bk->bs", output, hidden)
    soft = jax.nn.softmax(scores, axis=1)
    context = jnp.einsum("bsk,bs->bk", output, soft)
    logits = context @ params["w_out"].T + params["b_out"]
    return logits, soft


if __name__ == "__main__":
    vocab_size, embedding_dim, n_hidden, num_classes = 20, 16, 32, 4
    batch, seq_len = 2, 8
    H = n_hidden

    key = jax.random.PRNGKey(0)
    ks = jax.random.split(key, 16)
    scale = 1.0 / np.sqrt(n_hidden)

    def uni(k, shape):
        return jax.random.uniform(k, shape, jnp.float32, minval=-scale, maxval=scale)

    params = {
        "embedding": jax.random.normal(ks[0], (vocab_size, embedding_dim), jnp.float32),
        # forward direction (gate order i, f, g, o like PyTorch)
        "wih_f": uni(ks[1], (embedding_dim, 4 * H)),
        "whh_f": uni(ks[2], (H, 4 * H)),
        "b_f": uni(ks[3], (1, 4 * H)) + uni(ks[4], (1, 4 * H)),   # b_ih + b_hh
        # backward direction
        "wih_b": uni(ks[5], (embedding_dim, 4 * H)),
        "whh_b": uni(ks[6], (H, 4 * H)),
        "b_b": uni(ks[7], (1, 4 * H)) + uni(ks[8], (1, 4 * H)),
        # output Linear(n_hidden*2, num_classes)
        "w_out": uni(ks[9], (num_classes, 2 * H)),
        "b_out": uni(ks[10], (1, num_classes)),
    }

    X = jax.random.randint(ks[11], (batch, seq_len), 0, vocab_size, dtype=jnp.int32)

    logits, attn = jax.jit(bilstm_attention_forward)(X, params)
    jax.block_until_ready((logits, attn))

    ref_logits, ref_attn = reference_forward(X, params)
    np.testing.assert_allclose(np.asarray(logits), np.asarray(ref_logits), rtol=1e-4, atol=1e-4)
    np.testing.assert_allclose(np.asarray(attn), np.asarray(ref_attn), rtol=1e-4, atol=1e-4)

    print("KERNEL_OK")
</pallas_src>

<mosaic_0001>
module attributes {stable_mosaic.version = 11 : i64} {
  func.func @bilstm_attention_kernel(%arg0: memref<16x16xf32, #tpu.memory_space<vmem>>, %arg1: memref<16x256xf32, #tpu.memory_space<vmem>>, %arg2: memref<32x128xf32, #tpu.memory_space<vmem>>, %arg3: memref<32x128xf32, #tpu.memory_space<vmem>>, %arg4: memref<1x256xf32, #tpu.memory_space<vmem>>, %arg5: memref<64x4xf32, #tpu.memory_space<vmem>>, %arg6: memref<1x4xf32, #tpu.memory_space<vmem>>, %arg7: memref<2x4xf32, #tpu.memory_space<vmem>>, %arg8: memref<2x8xf32, #tpu.memory_space<vmem>>, %arg9: memref<2x8x64xf32, #tpu.memory_space<vmem>>, %arg10: memref<2x64xf32, #tpu.memory_space<vmem>>) attributes {dimension_semantics = [], scalar_prefetch = 0 : i64, scratch_operands = 2 : i64, tpu.core_type = #tpu.core_type<tc>} {
    %c0 = arith.constant 0 : index
    %c0_0 = arith.constant 0 : index
    %0 = vector.load %arg0[%c0, %c0_0] : memref<16x16xf32, #tpu.memory_space<vmem>>, vector<16x16xf32>
    %c0_1 = arith.constant 0 : index
    %c0_2 = arith.constant 0 : index
    %1 = vector.load %arg1[%c0_1, %c0_2] : memref<16x256xf32, #tpu.memory_space<vmem>>, vector<16x256xf32>
    %cst = arith.constant dense<0.000000e+00> : vector<16x256xf32>
    %2 = tpu.matmul %0, %1, %cst {dimension_numbers = #tpu.dot_dimension_numbers<[1], [0], [0], [1], [0, 0, 1, 1], [], []>} : vector<16x16xf32>, vector<16x256xf32>, vector<16x256xf32> -> vector<16x256xf32>
    %c0_3 = arith.constant 0 : index
    %c0_4 = arith.constant 0 : index
    %3 = vector.load %arg4[%c0_3, %c0_4] : memref<1x256xf32, #tpu.memory_space<vmem>>, vector<1x256xf32>
    %4 = vector.broadcast %3 : vector<1x256xf32> to vector<16x256xf32>
    %5 = arith.addf %2, %4 : vector<16x256xf32>
    %c0_5 = arith.constant 0 : index
    %c0_6 = arith.constant 0 : index
    %6 = vector.load %arg2[%c0_5, %c0_6] : memref<32x128xf32, #tpu.memory_space<vmem>>, vector<32x128xf32>
    %c0_7 = arith.constant 0 : index
    %c0_8 = arith.constant 0 : index
    %7 = vector.load %arg3[%c0_7, %c0_8] : memref<32x128xf32, #tpu.memory_space<vmem>>, vector<32x128xf32>
    %cst_9 = arith.constant 0.000000e+00 : f32
    %8 = vector.broadcast %cst_9 : f32 to vector<2x32xf32>
    %cst_10 = arith.constant 0.000000e+00 : f32
    %9 = vector.broadcast %cst_10 : f32 to vector<2x32xf32>
    %cst_11 = arith.constant 0.000000e+00 : f32
    %10 = vector.broadcast %cst_11 : f32 to vector<2x32xf32>
    %cst_12 = arith.constant 0.000000e+00 : f32
    %11 = vector.broadcast %cst_12 : f32 to vector<2x32xf32>
    %12 = vector.extract_strided_slice %5 {offsets = [0, 0], sizes = [2, 128], strides = [1, 1]} : vector<16x256xf32> to vector<2x128xf32>
    %13 = vector.extract_strided_slice %5 {offsets = [14, 128], sizes = [2, 128], strides = [1, 1]} : vector<16x256xf32> to vector<2x128xf32>
    %cst_13 = arith.constant dense<0.000000e+00> : vector<2x128xf32>
    %14 = tpu.matmul %8, %6, %cst_13 {dimension_numbers = #tpu.dot_dimension_numbers<[1], [0], [0], [1], [0, 0, 1, 1], [], []>} : vector<2x32xf32>, vector<32x128xf32>, vector<2x128xf32> -> vector<2x128xf32>
    %15 = arith.addf %12, %14 : vector<2x128xf32>
    %cst_14 = arith.constant dense<0.000000e+00> : vector<2x128xf32>
    %16 = tpu.matmul %10, %7, %cst_14 {dimension_numbers = #tpu.dot_dimension_numbers<[1], [0], [0], [1], [0, 0, 1, 1], [], []>} : vector<2x32xf32>, vector<32x128xf32>, vector<2x128xf32> -> vector<2x128xf32>
    %17 = arith.addf %13, %16 : vector<2x128xf32>
    %18 = vector.extract_strided_slice %15 {offsets = [0, 0], sizes = [2, 32], strides = [1, 1]} : vector<2x128xf32> to vector<2x32xf32>
    %19 = arith.negf %18 : vector<2x32xf32>
    %20 = math.exp %19 : vector<2x32xf32>
    %cst_15 = arith.constant 1.000000e+00 : f32
    %21 = vector.broadcast %cst_15 : f32 to vector<2x32xf32>
    %22 = arith.addf %21, %20 : vector<2x32xf32>
    %23 = arith.divf %21, %22 : vector<2x32xf32>
    %24 = vector.extract_strided_slice %15 {offsets = [0, 32], sizes = [2, 32], strides = [1, 1]} : vector<2x128xf32> to vector<2x32xf32>
    %25 = arith.negf %24 : vector<2x32xf32>
    %26 = math.exp %25 : vector<2x32xf32>
    %cst_16 = arith.constant 1.000000e+00 : f32
    %27 = vector.broadcast %cst_16 : f32 to vector<2x32xf32>
    %28 = arith.addf %27, %26 : vector<2x32xf32>
    %29 = arith.divf %27, %28 : vector<2x32xf32>
    %30 = vector.extract_strided_slice %15 {offsets = [0, 64], sizes = [2, 32], strides = [1, 1]} : vector<2x128xf32> to vector<2x32xf32>
    %31 = math.tanh %30 : vector<2x32xf32>
    %32 = vector.extract_strided_slice %15 {offsets = [0, 96], sizes = [2, 32], strides = [1, 1]} : vector<2x128xf32> to vector<2x32xf32>
    %33 = arith.negf %32 : vector<2x32xf32>
    %34 = math.exp %33 : vector<2x32xf32>
    %cst_17 = arith.constant 1.000000e+00 : f32
    %35 = vector.broadcast %cst_17 : f32 to vector<2x32xf32>
    %36 = arith.addf %35, %34 : vector<2x32xf32>
    %37 = arith.divf %35, %36 : vector<2x32xf32>
    %38 = arith.mulf %29, %9 : vector<2x32xf32>
    %39 = arith.mulf %23, %31 : vector<2x32xf32>
    %40 = arith.addf %38, %39 : vector<2x32xf32>
    %41 = math.tanh %40 : vector<2x32xf32>
    %42 = arith.mulf %37, %41 : vector<2x32xf32>
    %43 = vector.extract_strided_slice %17 {offsets = [0, 0], sizes = [2, 32], strides = [1, 1]} : vector<2x128xf32> to vector<2x32xf32>
    %44 = arith.negf %43 : vector<2x32xf32>
    %45 = math.exp %44 : vector<2x32xf32>
    %cst_18 = arith.constant 1.000000e+00 : f32
    %46 = vector.broadcast %cst_18 : f32 to vector<2x32xf32>
    %47 = arith.addf %46, %45 : vector<2x32xf32>
    %48 = arith.divf %46, %47 : vector<2x32xf32>
    %49 = vector.extract_strided_slice %17 {offsets = [0, 32], sizes = [2, 32], strides = [1, 1]} : vector<2x128xf32> to vector<2x32xf32>
    %50 = arith.negf %49 : vector<2x32xf32>
    %51 = math.exp %50 : vector<2x32xf32>
    %cst_19 = arith.constant 1.000000e+00 : f32
    %52 = vector.broadcast %cst_19 : f32 to vector<2x32xf32>
    %53 = arith.addf %52, %51 : vector<2x32xf32>
    %54 = arith.divf %52, %53 : vector<2x32xf32>
    %55 = vector.extract_strided_slice %17 {offsets = [0, 64], sizes = [2, 32], strides = [1, 1]} : vector<2x128xf32> to vector<2x32xf32>
    %56 = math.tanh %55 : vector<2x32xf32>
    %57 = vector.extract_strided_slice %17 {offsets = [0, 96], sizes = [2, 32], strides = [1, 1]} : vector<2x128xf32> to vector<2x32xf32>
    %58 = arith.negf %57 : vector<2x32xf32>
    %59 = math.exp %58 : vector<2x32xf32>
    %cst_20 = arith.constant 1.000000e+00 : f32
    %60 = vector.broadcast %cst_20 : f32 to vector<2x32xf32>
    %61 = arith.addf %60, %59 : vector<2x32xf32>
    %62 = arith.divf %60, %61 : vector<2x32xf32>
    %63 = arith.mulf %54, %11 : vector<2x32xf32>
    %64 = arith.mulf %48, %56 : vector<2x32xf32>
    %65 = arith.addf %63, %64 : vector<2x32xf32>
    %66 = math.tanh %65 : vector<2x32xf32>
    %67 = arith.mulf %62, %66 : vector<2x32xf32>
    %68 = vector.shape_cast %42 : vector<2x32xf32> to vector<2x1x32xf32>
    %c0_21 = arith.constant 0 : index
    %c0_22 = arith.constant 0 : index
    %c0_23 = arith.constant 0 : index
    %69 = vector.load %arg9[%c0_21, %c0_22, %c0_23] : memref<2x8x64xf32, #tpu.memory_space<vmem>>, vector<2x1x32xf32>
    tpu.vector_store %arg9[%c0_21, %c0_22, %c0_23], %68 {strides = array<i32>} : memref<2x8x64xf32, #tpu.memory_space<vmem>>, vector<2x1x32xf32>,
    %70 = vector.shape_cast %67 : vector<2x32xf32> to vector<2x1x32xf32>
    %c0_24 = arith.constant 0 : index
    %c7 = arith.constant 7 : index
    %c32 = arith.constant 32 : index
    %71 = vector.load %arg9[%c0_24, %c7, %c32] : memref<2x8x64xf32, #tpu.memory_space<vmem>>, vector<2x1x32xf32>
    tpu.vector_store %arg9[%c0_24, %c7, %c32], %70 {strides = array<i32>} : memref<2x8x64xf32, #tpu.memory_space<vmem>>, vector<2x1x32xf32>,
    %72 = vector.extract_strided_slice %5 {offsets = [2, 0], sizes = [2, 128], strides = [1, 1]} : vector<16x256xf32> to vector<2x128xf32>
    %73 = vector.extract_strided_slice %5 {offsets = [12, 128], sizes = [2, 128], strides = [1, 1]} : vector<16x256xf32> to vector<2x128xf32>
    %cst_25 = arith.constant dense<0.000000e+00> : vector<2x128xf32>
    %74 = tpu.matmul %42, %6, %cst_25 {dimension_numbers = #tpu.dot_dimension_numbers<[1], [0], [0], [1], [0, 0, 1, 1], [], []>} : vector<2x32xf32>, vector<32x128xf32>, vector<2x128xf32> -> vector<2x128xf32>
    %75 = arith.addf %72, %74 : vector<2x128xf32>
    %cst_26 = arith.constant dense<0.000000e+00> : vector<2x128xf32>
    %76 = tpu.matmul %67, %7, %cst_26 {dimension_numbers = #tpu.dot_dimension_numbers<[1], [0], [0], [1], [0, 0, 1, 1], [], []>} : vector<2x32xf32>, vector<32x128xf32>, vector<2x128xf32> -> vector<2x128xf32>
    %77 = arith.addf %73, %76 : vector<2x128xf32>
    %78 = vector.extract_strided_slice %75 {offsets = [0, 0], sizes = [2, 32], strides = [1, 1]} : vector<2x128xf32> to vector<2x32xf32>
    %79 = arith.negf %78 : vector<2x32xf32>
    %80 = math.exp %79 : vector<2x32xf32>
    %cst_27 = arith.constant 1.000000e+00 : f32
    %81 = vector.broadcast %cst_27 : f32 to vector<2x32xf32>
    %82 = arith.addf %81, %80 : vector<2x32xf32>
    %83 = arith.divf %81, %82 : vector<2x32xf32>
    %84 = vector.extract_strided_slice %75 {offsets = [0, 32], sizes = [2, 32], strides = [1, 1]} : vector<2x128xf32> to vector<2x32xf32>
    %85 = arith.negf %84 : vector<2x32xf32>
    %86 = math.exp %85 : vector<2x32xf32>
    %cst_28 = arith.constant 1.000000e+00 : f32
    %87 = vector.broadcast %cst_28 : f32 to vector<2x32xf32>
    %88 = arith.addf %87, %86 : vector<2x32xf32>
    %89 = arith.divf %87, %88 : vector<2x32xf32>
    %90 = vector.extract_strided_slice %75 {offsets = [0, 64], sizes = [2, 32], strides = [1, 1]} : vector<2x128xf32> to vector<2x32xf32>
    %91 = math.tanh %90 : vector<2x32xf32>
    %92 = vector.extract_strided_slice %75 {offsets = [0, 96], sizes = [2, 32], strides = [1, 1]} : vector<2x128xf32> to vector<2x32xf32>
    %93 = arith.negf %92 : vector<2x32xf32>
    %94 = math.exp %93 : vector<2x32xf32>
    %cst_29 = arith.constant 1.000000e+00 : f32
    %95 = vector.broadcast %cst_29 : f32 to vector<2x32xf32>
    %96 = arith.addf %95, %94 : vector<2x32xf32>
    %97 = arith.divf %95, %96 : vector<2x32xf32>
    %98 = arith.mulf %89, %40 : vector<2x32xf32>
    %99 = arith.mulf %83, %91 : vector<2x32xf32>
    %100 = arith.addf %98, %99 : vector<2x32xf32>
    %101 = math.tanh %100 : vector<2x32xf32>
    %102 = arith.mulf %97, %101 : vector<2x32xf32>
    %103 = vector.extract_strided_slice %77 {offsets = [0, 0], sizes = [2, 32], strides = [1, 1]} : vector<2x128xf32> to vector<2x32xf32>
    %104 = arith.negf %103 : vector<2x32xf32>
    %105 = math.exp %104 : vector<2x32xf32>
    %cst_30 = arith.constant 1.000000e+00 : f32
    %106 = vector.broadcast %cst_30 : f32 to vector<2x32xf32>
    %107 = arith.addf %106, %105 : vector<2x32xf32>
    %108 = arith.divf %106, %107 : vector<2x32xf32>
    %109 = vector.extract_strided_slice %77 {offsets = [0, 32], sizes = [2, 32], strides = [1, 1]} : vector<2x128xf32> to vector<2x32xf32>
    %110 = arith.negf %109 : vector<2x32xf32>
    %111 = math.exp %110 : vector<2x32xf32>
    %cst_31 = arith.constant 1.000000e+00 : f32
    %112 = vector.broadcast %cst_31 : f32 to vector<2x32xf32>
    %113 = arith.addf %112, %111 : vector<2x32xf32>
    %114 = arith.divf %112, %113 : vector<2x32xf32>
    %115 = vector.extract_strided_slice %77 {offsets = [0, 64], sizes = [2, 32], strides = [1, 1]} : vector<2x128xf32> to vector<2x32xf32>
    %116 = math.tanh %115 : vector<2x32xf32>
    %117 = vector.extract_strided_slice %77 {offsets = [0, 96], sizes = [2, 32], strides = [1, 1]} : vector<2x128xf32> to vector<2x32xf32>
    %118 = arith.negf %117 : vector<2x32xf32>
    %119 = math.exp %118 : vector<2x32xf32>
    %cst_32 = arith.constant 1.000000e+00 : f32
    %120 = vector.broadcast %cst_32 : f32 to vector<2x32xf32>
    %121 = arith.addf %120, %119 : vector<2x32xf32>
    %122 = arith.divf %120, %121 : vector<2x32xf32>
    %123 = arith.mulf %114, %65 : vector<2x32xf32>
    %124 = arith.mulf %108, %116 : vector<2x32xf32>
    %125 = arith.addf %123, %124 : vector<2x32xf32>
    %126 = math.tanh %125 : vector<2x32xf32>
    %127 = arith.mulf %122, %126 : vector<2x32xf32>
    %128 = vector.shape_cast %102 : vector<2x32xf32> to vector<2x1x32xf32>
    %c0_33 = arith.constant 0 : index
    %c1 = arith.constant 1 : index
    %c0_34 = arith.constant 0 : index
    %129 = vector.load %arg9[%c0_33, %c1, %c0_34] : memref<2x8x64xf32, #tpu.memory_space<vmem>>, vector<2x1x32xf32>
    tpu.vector_store %arg9[%c0_33, %c1, %c0_34], %128 {strides = array<i32>} : memref<2x8x64xf32, #tpu.memory_space<vmem>>, vector<2x1x32xf32>,
    %130 = vector.shape_cast %127 : vector<2x32xf32> to vector<2x1x32xf32>
    %c0_35 = arith.constant 0 : index
    %c6 = arith.constant 6 : index
    %c32_36 = arith.constant 32 : index
    %131 = vector.load %arg9[%c0_35, %c6, %c32_36] : memref<2x8x64xf32, #tpu.memory_space<vmem>>, vector<2x1x32xf32>
    tpu.vector_store %arg9[%c0_35, %c6, %c32_36], %130 {strides = array<i32>} : memref<2x8x64xf32, #tpu.memory_space<vmem>>, vector<2x1x32xf32>,
    %132 = vector.extract_strided_slice %5 {offsets = [4, 0], sizes = [2, 128], strides = [1, 1]} : vector<16x256xf32> to vector<2x128xf32>
    %133 = vector.extract_strided_slice %5 {offsets = [10, 128], sizes = [2, 128], strides = [1, 1]} : vector<16x256xf32> to vector<2x128xf32>
    %cst_37 = arith.constant dense<0.000000e+00> : vector<2x128xf32>
    %134 = tpu.matmul %102, %6, %cst_37 {dimension_numbers = #tpu.dot_dimension_numbers<[1], [0], [0], [1], [0, 0, 1, 1], [], []>} : vector<2x32xf32>, vector<32x128xf32>, vector<2x128xf32> -> vector<2x128xf32>
    %135 = arith.addf %132, %134 : vector<2x128xf32>
    %cst_38 = arith.constant dense<0.000000e+00> : vector<2x128xf32>
    %136 = tpu.matmul %127, %7, %cst_38 {dimension_numbers = #tpu.dot_dimension_numbers<[1], [0], [0], [1], [0, 0, 1, 1], [], []>} : vector<2x32xf32>, vector<32x128xf32>, vector<2x128xf32> -> vector<2x128xf32>
    %137 = arith.addf %133, %136 : vector<2x128xf32>
    %138 = vector.extract_strided_slice %135 {offsets = [0, 0], sizes = [2, 32], strides = [1, 1]} : vector<2x128xf32> to vector<2x32xf32>
    %139 = arith.negf %138 : vector<2x32xf32>
    %140 = math.exp %139 : vector<2x32xf32>
    %cst_39 = arith.constant 1.000000e+00 : f32
    %141 = vector.broadcast %cst_39 : f32 to vector<2x32xf32>
    %142 = arith.addf %141, %140 : vector<2x32xf32>
    %143 = arith.divf %141, %142 : vector<2x32xf32>
    %144 = vector.extract_strided_slice %135 {offsets = [0, 32], sizes = [2, 32], strides = [1, 1]} : vector<2x128xf32> to vector<2x32xf32>
    %145 = arith.negf %144 : vector<2x32xf32>
    %146 = math.exp %145 : vector<2x32xf32>
    %cst_40 = arith.constant 1.000000e+00 : f32
    %147 = vector.broadcast %cst_40 : f32 to vector<2x32xf32>
    %148 = arith.addf %147, %146 : vector<2x32xf32>
    %149 = arith.divf %147, %148 : vector<2x32xf32>
    %150 = vector.extract_strided_slice %135 {offsets = [0, 64], sizes = [2, 32], strides = [1, 1]} : vector<2x128xf32> to vector<2x32xf32>
    %151 = math.tanh %150 : vector<2x32xf32>
    %152 = vector.extract_strided_slice %135 {offsets = [0, 96], sizes = [2, 32], strides = [1, 1]} : vector<2x128xf32> to vector<2x32xf32>
    %153 = arith.negf %152 : vector<2x32xf32>
    %154 = math.exp %153 : vector<2x32xf32>
    %cst_41 = arith.constant 1.000000e+00 : f32
    %155 = vector.broadcast %cst_41 : f32 to vector<2x32xf32>
    %156 = arith.addf %155, %154 : vector<2x32xf32>
    %157 = arith.divf %155, %156 : vector<2x32xf32>
    %158 = arith.mulf %149, %100 : vector<2x32xf32>
    %159 = arith.mulf %143, %151 : vector<2x32xf32>
    %160 = arith.addf %158, %159 : vector<2x32xf32>
    %161 = math.tanh %160 : vector<2x32xf32>
    %162 = arith.mulf %157, %161 : vector<2x32xf32>
    %163 = vector.extract_strided_slice %137 {offsets = [0, 0], sizes = [2, 32], strides = [1, 1]} : vector<2x128xf32> to vector<2x32xf32>
    %164 = arith.negf %163 : vector<2x32xf32>
    %165 = math.exp %164 : vector<2x32xf32>
    %cst_42 = arith.constant 1.000000e+00 : f32
    %166 = vector.broadcast %cst_42 : f32 to vector<2x32xf32>
    %167 = arith.addf %166, %165 : vector<2x32xf32>
    %168 = arith.divf %166, %167 : vector<2x32xf32>
    %169 = vector.extract_strided_slice %137 {offsets = [0, 32], sizes = [2, 32], strides = [1, 1]} : vector<2x128xf32> to vector<2x32xf32>
    %170 = arith.negf %169 : vector<2x32xf32>
    %171 = math.exp %170 : vector<2x32xf32>
    %cst_43 = arith.constant 1.000000e+00 : f32
    %172 = vector.broadcast %cst_43 : f32 to vector<2x32xf32>
    %173 = arith.addf %172, %171 : vector<2x32xf32>
    %174 = arith.divf %172, %173 : vector<2x32xf32>
    %175 = vector.extract_strided_slice %137 {offsets = [0, 64], sizes = [2, 32], strides = [1, 1]} : vector<2x128xf32> to vector<2x32xf32>
    %176 = math.tanh %175 : vector<2x32xf32>
    %177 = vector.extract_strided_slice %137 {offsets = [0, 96], sizes = [2, 32], strides = [1, 1]} : vector<2x128xf32> to vector<2x32xf32>
    %178 = arith.negf %177 : vector<2x32xf32>
    %179 = math.exp %178 : vector<2x32xf32>
    %cst_44 = arith.constant 1.000000e+00 : f32
    %180 = vector.broadcast %cst_44 : f32 to vector<2x32xf32>
    %181 = arith.addf %180, %179 : vector<2x32xf32>
    %182 = arith.divf %180, %181 : vector<2x32xf32>
    %183 = arith.mulf %174, %125 : vector<2x32xf32>
    %184 = arith.mulf %168, %176 : vector<2x32xf32>
    %185 = arith.addf %183, %184 : vector<2x32xf32>
    %186 = math.tanh %185 : vector<2x32xf32>
    %187 = arith.mulf %182, %186 : vector<2x32xf32>
    %188 = vector.shape_cast %162 : vector<2x32xf32> to vector<2x1x32xf32>
    %c0_45 = arith.constant 0 : index
    %c2 = arith.constant 2 : index
    %c0_46 = arith.constant 0 : index
    %189 = vector.load %arg9[%c0_45, %c2, %c0_46] : memref<2x8x64xf32, #tpu.memory_space<vmem>>, vector<2x1x32xf32>
    tpu.vector_store %arg9[%c0_45, %c2, %c0_46], %188 {strides = array<i32>} : memref<2x8x64xf32, #tpu.memory_space<vmem>>, vector<2x1x32xf32>,
    %190 = vector.shape_cast %187 : vector<2x32xf32> to vector<2x1x32xf32>
    %c0_47 = arith.constant 0 : index
    %c5 = arith.constant 5 : index
    %c32_48 = arith.constant 32 : index
    %191 = vector.load %arg9[%c0_47, %c5, %c32_48] : memref<2x8x64xf32, #tpu.memory_space<vmem>>, vector<2x1x32xf32>
    tpu.vector_store %arg9[%c0_47, %c5, %c32_48], %190 {strides = array<i32>} : memref<2x8x64xf32, #tpu.memory_space<vmem>>, vector<2x1x32xf32>,
    %192 = vector.extract_strided_slice %5 {offsets = [6, 0], sizes = [2, 128], strides = [1, 1]} : vector<16x256xf32> to vector<2x128xf32>
    %193 = vector.extract_strided_slice %5 {offsets = [8, 128], sizes = [2, 128], strides = [1, 1]} : vector<16x256xf32> to vector<2x128xf32>
    %cst_49 = arith.constant dense<0.000000e+00> : vector<2x128xf32>
    %194 = tpu.matmul %162, %6, %cst_49 {dimension_numbers = #tpu.dot_dimension_numbers<[1], [0], [0], [1], [0, 0, 1, 1], [], []>} : vector<2x32xf32>, vector<32x128xf32>, vector<2x128xf32> -> vector<2x128xf32>
    %195 = arith.addf %192, %194 : vector<2x128xf32>
    %cst_50 = arith.constant dense<0.000000e+00> : vector<2x128xf32>
    %196 = tpu.matmul %187, %7, %cst_50 {dimension_numbers = #tpu.dot_dimension_numbers<[1], [0], [0], [1], [0, 0, 1, 1], [], []>} : vector<2x32xf32>, vector<32x128xf32>, vector<2x128xf32> -> vector<2x128xf32>
    %197 = arith.addf %193, %196 : vector<2x128xf32>
    %198 = vector.extract_strided_slice %195 {offsets = [0, 0], sizes = [2, 32], strides = [1, 1]} : vector<2x128xf32> to vector<2x32xf32>
    %199 = arith.negf %198 : vector<2x32xf32>
    %200 = math.exp %199 : vector<2x32xf32>
    %cst_51 = arith.constant 1.000000e+00 : f32
    %201 = vector.broadcast %cst_51 : f32 to vector<2x32xf32>
    %202 = arith.addf %201, %200 : vector<2x32xf32>
    %203 = arith.divf %201, %202 : vector<2x32xf32>
    %204 = vector.extract_strided_slice %195 {offsets = [0, 32], sizes = [2, 32], strides = [1, 1]} : vector<2x128xf32> to vector<2x32xf32>
    %205 = arith.negf %204 : vector<2x32xf32>
    %206 = math.exp %205 : vector<2x32xf32>
    %cst_52 = arith.constant 1.000000e+00 : f32
    %207 = vector.broadcast %cst_52 : f32 to vector<2x32xf32>
    %208 = arith.addf %207, %206 : vector<2x32xf32>
    %209 = arith.divf %207, %208 : vector<2x32xf32>
    %210 = vector.extract_strided_slice %195 {offsets = [0, 64], sizes = [2, 32], strides = [1, 1]} : vector<2x128xf32> to vector<2x32xf32>
    %211 = math.tanh %210 : vector<2x32xf32>
    %212 = vector.extract_strided_slice %195 {offsets = [0, 96], sizes = [2, 32], strides = [1, 1]} : vector<2x128xf32> to vector<2x32xf32>
    %213 = arith.negf %212 : vector<2x32xf32>
    %214 = math.exp %213 : vector<2x32xf32>
    %cst_53 = arith.constant 1.000000e+00 : f32
    %215 = vector.broadcast %cst_53 : f32 to vector<2x32xf32>
    %216 = arith.addf %215, %214 : vector<2x32xf32>
    %217 = arith.divf %215, %216 : vector<2x32xf32>
    %218 = arith.mulf %209, %160 : vector<2x32xf32>
    %219 = arith.mulf %203, %211 : vector<2x32xf32>
    %220 = arith.addf %218, %219 : vector<2x32xf32>
    %221 = math.tanh %220 : vector<2x32xf32>
    %222 = arith.mulf %217, %221 : vector<2x32xf32>
    %223 = vector.extract_strided_slice %197 {offsets = [0, 0], sizes = [2, 32], strides = [1, 1]} : vector<2x128xf32> to vector<2x32xf32>
    %224 = arith.negf %223 : vector<2x32xf32>
    %225 = math.exp %224 : vector<2x32xf32>
    %cst_54 = arith.constant 1.000000e+00 : f32
    %226 = vector.broadcast %cst_54 : f32 to vector<2x32xf32>
    %227 = arith.addf %226, %225 : vector<2x32xf32>
    %228 = arith.divf %226, %227 : vector<2x32xf32>
    %229 = vector.extract_strided_slice %197 {offsets = [0, 32], sizes = [2, 32], strides = [1, 1]} : vector<2x128xf32> to vector<2x32xf32>
    %230 = arith.negf %229 : vector<2x32xf32>
    %231 = math.exp %230 : vector<2x32xf32>
    %cst_55 = arith.constant 1.000000e+00 : f32
    %232 = vector.broadcast %cst_55 : f32 to vector<2x32xf32>
    %233 = arith.addf %232, %231 : vector<2x32xf32>
    %234 = arith.divf %232, %233 : vector<2x32xf32>
    %235 = vector.extract_strided_slice %197 {offsets = [0, 64], sizes = [2, 32], strides = [1, 1]} : vector<2x128xf32> to vector<2x32xf32>
    %236 = math.tanh %235 : vector<2x32xf32>
    %237 = vector.extract_strided_slice %197 {offsets = [0, 96], sizes = [2, 32], strides = [1, 1]} : vector<2x128xf32> to vector<2x32xf32>
    %238 = arith.negf %237 : vector<2x32xf32>
    %239 = math.exp %238 : vector<2x32xf32>
    %cst_56 = arith.constant 1.000000e+00 : f32
    %240 = vector.broadcast %cst_56 : f32 to vector<2x32xf32>
    %241 = arith.addf %240, %239 : vector<2x32xf32>
    %242 = arith.divf %240, %241 : vector<2x32xf32>
    %243 = arith.mulf %234, %185 : vector<2x32xf32>
    %244 = arith.mulf %228, %236 : vector<2x32xf32>
    %245 = arith.addf %243, %244 : vector<2x32xf32>
    %246 = math.tanh %245 : vector<2x32xf32>
    %247 = arith.mulf %242, %246 : vector<2x32xf32>
    %248 = vector.shape_cast %222 : vector<2x32xf32> to vector<2x1x32xf32>
    %c0_57 = arith.constant 0 : index
    %c3 = arith.constant 3 : index
    %c0_58 = arith.constant 0 : index
    %249 = vector.load %arg9[%c0_57, %c3, %c0_58] : memref<2x8x64xf32, #tpu.memory_space<vmem>>, vector<2x1x32xf32>
    tpu.vector_store %arg9[%c0_57, %c3, %c0_58], %248 {strides = array<i32>} : memref<2x8x64xf32, #tpu.memory_space<vmem>>, vector<2x1x32xf32>,
    %250 = vector.shape_cast %247 : vector<2x32xf32> to vector<2x1x32xf32>
    %c0_59 = arith.constant 0 : index
    %c4 = arith.constant 4 : index
    %c32_60 = arith.constant 32 : index
    %251 = vector.load %arg9[%c0_59, %c4, %c32_60] : memref<2x8x64xf32, #tpu.memory_space<vmem>>, vector<2x1x32xf32>
    tpu.vector_store %arg9[%c0_59, %c4, %c32_60], %250 {strides = array<i32>} : memref<2x8x64xf32, #tpu.memory_space<vmem>>, vector<2x1x32xf32>,
    %252 = vector.extract_strided_slice %5 {offsets = [8, 0], sizes = [2, 128], strides = [1, 1]} : vector<16x256xf32> to vector<2x128xf32>
    %253 = vector.extract_strided_slice %5 {offsets = [6, 128], sizes = [2, 128], strides = [1, 1]} : vector<16x256xf32> to vector<2x128xf32>
    %cst_61 = arith.constant dense<0.000000e+00> : vector<2x128xf32>
    %254 = tpu.matmul %222, %6, %cst_61 {dimension_numbers = #tpu.dot_dimension_numbers<[1], [0], [0], [1], [0, 0, 1, 1], [], []>} : vector<2x32xf32>, vector<32x128xf32>, vector<2x128xf32> -> vector<2x128xf32>
    %255 = arith.addf %252, %254 : vector<2x128xf32>
    %cst_62 = arith.constant dense<0.000000e+00> : vector<2x128xf32>
    %256 = tpu.matmul %247, %7, %cst_62 {dimension_numbers = #tpu.dot_dimension_numbers<[1], [0], [0], [1], [0, 0, 1, 1], [], []>} : vector<2x32xf32>, vector<32x128xf32>, vector<2x128xf32> -> vector<2x128xf32>
    %257 = arith.addf %253, %256 : vector<2x128xf32>
    %258 = vector.extract_strided_slice %255 {offsets = [0, 0], sizes = [2, 32], strides = [1, 1]} : vector<2x128xf32> to vector<2x32xf32>
    %259 = arith.negf %258 : vector<2x32xf32>
    %260 = math.exp %259 : vector<2x32xf32>
    %cst_63 = arith.constant 1.000000e+00 : f32
    %261 = vector.broadcast %cst_63 : f32 to vector<2x32xf32>
    %262 = arith.addf %261, %260 : vector<2x32xf32>
    %263 = arith.divf %261, %262 : vector<2x32xf32>
    %264 = vector.extract_strided_slice %255 {offsets = [0, 32], sizes = [2, 32], strides = [1, 1]} : vector<2x128xf32> to vector<2x32xf32>
    %265 = arith.negf %264 : vector<2x32xf32>
    %266 = math.exp %265 : vector<2x32xf32>
    %cst_64 = arith.constant 1.000000e+00 : f32
    %267 = vector.broadcast %cst_64 : f32 to vector<2x32xf32>
    %268 = arith.addf %267, %266 : vector<2x32xf32>
    %269 = arith.divf %267, %268 : vector<2x32xf32>
    %270 = vector.extract_strided_slice %255 {offsets = [0, 64], sizes = [2, 32], strides = [1, 1]} : vector<2x128xf32> to vector<2x32xf32>
    %271 = math.tanh %270 : vector<2x32xf32>
    %272 = vector.extract_strided_slice %255 {offsets = [0, 96], sizes = [2, 32], strides = [1, 1]} : vector<2x128xf32> to vector<2x32xf32>
    %273 = arith.negf %272 : vector<2x32xf32>
    %274 = math.exp %273 : vector<2x32xf32>
    %cst_65 = arith.constant 1.000000e+00 : f32
    %275 = vector.broadcast %cst_65 : f32 to vector<2x32xf32>
    %276 = arith.addf %275, %274 : vector<2x32xf32>
    %277 = arith.divf %275, %276 : vector<2x32xf32>
    %278 = arith.mulf %269, %220 : vector<2x32xf32>
    %279 = arith.mulf %263, %271 : vector<2x32xf32>
    %280 = arith.addf %278, %279 : vector<2x32xf32>
    %281 = math.tanh %280 : vector<2x32xf32>
    %282 = arith.mulf %277, %281 : vector<2x32xf32>
    %283 = vector.extract_strided_slice %257 {offsets = [0, 0], sizes = [2, 32], strides = [1, 1]} : vector<2x128xf32> to vector<2x32xf32>
    %284 = arith.negf %283 : vector<2x32xf32>
    %285 = math.exp %284 : vector<2x32xf32>
    %cst_66 = arith.constant 1.000000e+00 : f32
    %286 = vector.broadcast %cst_66 : f32 to vector<2x32xf32>
    %287 = arith.addf %286, %285 : vector<2x32xf32>
    %288 = arith.divf %286, %287 : vector<2x32xf32>
    %289 = vector.extract_strided_slice %257 {offsets = [0, 32], sizes = [2, 32], strides = [1, 1]} : vector<2x128xf32> to vector<2x32xf32>
    %290 = arith.negf %289 : vector<2x32xf32>
    %291 = math.exp %290 : vector<2x32xf32>
    %cst_67 = arith.constant 1.000000e+00 : f32
    %292 = vector.broadcast %cst_67 : f32 to vector<2x32xf32>
    %293 = arith.addf %292, %291 : vector<2x32xf32>
    %294 = arith.divf %292, %293 : vector<2x32xf32>
    %295 = vector.extract_strided_slice %257 {offsets = [0, 64], sizes = [2, 32], strides = [1, 1]} : vector<2x128xf32> to vector<2x32xf32>
    %296 = math.tanh %295 : vector<2x32xf32>
    %297 = vector.extract_strided_slice %257 {offsets = [0, 96], sizes = [2, 32], strides = [1, 1]} : vector<2x128xf32> to vector<2x32xf32>
    %298 = arith.negf %297 : vector<2x32xf32>
    %299 = math.exp %298 : vector<2x32xf32>
    %cst_68 = arith.constant 1.000000e+00 : f32
    %300 = vector.broadcast %cst_68 : f32 to vector<2x32xf32>
    %301 = arith.addf %300, %299 : vector<2x32xf32>
    %302 = arith.divf %300, %301 : vector<2x32xf32>
    %303 = arith.mulf %294, %245 : vector<2x32xf32>
    %304 = arith.mulf %288, %296 : vector<2x32xf32>
    %305 = arith.addf %303, %304 : vector<2x32xf32>
    %306 = math.tanh %305 : vector<2x32xf32>
    %307 = arith.mulf %302, %306 : vector<2x32xf32>
    %308 = vector.shape_cast %282 : vector<2x32xf32> to vector<2x1x32xf32>
    %c0_69 = arith.constant 0 : index
    %c4_70 = arith.constant 4 : index
    %c0_71 = arith.constant 0 : index
    %309 = vector.load %arg9[%c0_69, %c4_70, %c0_71] : memref<2x8x64xf32, #tpu.memory_space<vmem>>, vector<2x1x32xf32>
    tpu.vector_store %arg9[%c0_69, %c4_70, %c0_71], %308 {strides = array<i32>} : memref<2x8x64xf32, #tpu.memory_space<vmem>>, vector<2x1x32xf32>,
    %310 = vector.shape_cast %307 : vector<2x32xf32> to vector<2x1x32xf32>
    %c0_72 = arith.constant 0 : index
    %c3_73 = arith.constant 3 : index
    %c32_74 = arith.constant 32 : index
    %311 = vector.load %arg9[%c0_72, %c3_73, %c32_74] : memref<2x8x64xf32, #tpu.memory_space<vmem>>, vector<2x1x32xf32>
    tpu.vector_store %arg9[%c0_72, %c3_73, %c32_74], %310 {strides = array<i32>} : memref<2x8x64xf32, #tpu.memory_space<vmem>>, vector<2x1x32xf32>,
    %312 = vector.extract_strided_slice %5 {offsets = [10, 0], sizes = [2, 128], strides = [1, 1]} : vector<16x256xf32> to vector<2x128xf32>
    %313 = vector.extract_strided_slice %5 {offsets = [4, 128], sizes = [2, 128], strides = [1, 1]} : vector<16x256xf32> to vector<2x128xf32>
    %cst_75 = arith.constant dense<0.000000e+00> : vector<2x128xf32>
    %314 = tpu.matmul %282, %6, %cst_75 {dimension_numbers = #tpu.dot_dimension_numbers<[1], [0], [0], [1], [0, 0, 1, 1], [], []>} : vector<2x32xf32>, vector<32x128xf32>, vector<2x128xf32> -> vector<2x128xf32>
    %315 = arith.addf %312, %314 : vector<2x128xf32>
    %cst_76 = arith.constant dense<0.000000e+00> : vector<2x128xf32>
    %316 = tpu.matmul %307, %7, %cst_76 {dimension_numbers = #tpu.dot_dimension_numbers<[1], [0], [0], [1], [0, 0, 1, 1], [], []>} : vector<2x32xf32>, vector<32x128xf32>, vector<2x128xf32> -> vector<2x128xf32>
    %317 = arith.addf %313, %316 : vector<2x128xf32>
    %318 = vector.extract_strided_slice %315 {offsets = [0, 0], sizes = [2, 32], strides = [1, 1]} : vector<2x128xf32> to vector<2x32xf32>
    %319 = arith.negf %318 : vector<2x32xf32>
    %320 = math.exp %319 : vector<2x32xf32>
    %cst_77 = arith.constant 1.000000e+00 : f32
    %321 = vector.broadcast %cst_77 : f32 to vector<2x32xf32>
    %322 = arith.addf %321, %320 : vector<2x32xf32>
    %323 = arith.divf %321, %322 : vector<2x32xf32>
    %324 = vector.extract_strided_slice %315 {offsets = [0, 32], sizes = [2, 32], strides = [1, 1]} : vector<2x128xf32> to vector<2x32xf32>
    %325 = arith.negf %324 : vector<2x32xf32>
    %326 = math.exp %325 : vector<2x32xf32>
    %cst_78 = arith.constant 1.000000e+00 : f32
    %327 = vector.broadcast %cst_78 : f32 to vector<2x32xf32>
    %328 = arith.addf %327, %326 : vector<2x32xf32>
    %329 = arith.divf %327, %328 : vector<2x32xf32>
    %330 = vector.extract_strided_slice %315 {offsets = [0, 64], sizes = [2, 32], strides = [1, 1]} : vector<2x128xf32> to vector<2x32xf32>
    %331 = math.tanh %330 : vector<2x32xf32>
    %332 = vector.extract_strided_slice %315 {offsets = [0, 96], sizes = [2, 32], strides = [1, 1]} : vector<2x128xf32> to vector<2x32xf32>
    %333 = arith.negf %332 : vector<2x32xf32>
    %334 = math.exp %333 : vector<2x32xf32>
    %cst_79 = arith.constant 1.000000e+00 : f32
    %335 = vector.broadcast %cst_79 : f32 to vector<2x32xf32>
    %336 = arith.addf %335, %334 : vector<2x32xf32>
    %337 = arith.divf %335, %336 : vector<2x32xf32>
    %338 = arith.mulf %329, %280 : vector<2x32xf32>
    %339 = arith.mulf %323, %331 : vector<2x32xf32>
    %340 = arith.addf %338, %339 : vector<2x32xf32>
    %341 = math.tanh %340 : vector<2x32xf32>
    %342 = arith.mulf %337, %341 : vector<2x32xf32>
    %343 = vector.extract_strided_slice %317 {offsets = [0, 0], sizes = [2, 32], strides = [1, 1]} : vector<2x128xf32> to vector<2x32xf32>
    %344 = arith.negf %343 : vector<2x32xf32>
    %345 = math.exp %344 : vector<2x32xf32>
    %cst_80 = arith.constant 1.000000e+00 : f32
    %346 = vector.broadcast %cst_80 : f32 to vector<2x32xf32>
    %347 = arith.addf %346, %345 : vector<2x32xf32>
    %348 = arith.divf %346, %347 : vector<2x32xf32>
    %349 = vector.extract_strided_slice %317 {offsets = [0, 32], sizes = [2, 32], strides = [1, 1]} : vector<2x128xf32> to vector<2x32xf32>
    %350 = arith.negf %349 : vector<2x32xf32>
    %351 = math.exp %350 : vector<2x32xf32>
    %cst_81 = arith.constant 1.000000e+00 : f32
    %352 = vector.broadcast %cst_81 : f32 to vector<2x32xf32>
    %353 = arith.addf %352, %351 : vector<2x32xf32>
    %354 = arith.divf %352, %353 : vector<2x32xf32>
    %355 = vector.extract_strided_slice %317 {offsets = [0, 64], sizes = [2, 32], strides = [1, 1]} : vector<2x128xf32> to vector<2x32xf32>
    %356 = math.tanh %355 : vector<2x32xf32>
    %357 = vector.extract_strided_slice %317 {offsets = [0, 96], sizes = [2, 32], strides = [1, 1]} : vector<2x128xf32> to vector<2x32xf32>
    %358 = arith.negf %357 : vector<2x32xf32>
    %359 = math.exp %358 : vector<2x32xf32>
    %cst_82 = arith.constant 1.000000e+00 : f32
    %360 = vector.broadcast %cst_82 : f32 to vector<2x32xf32>
    %361 = arith.addf %360, %359 : vector<2x32xf32>
    %362 = arith.divf %360, %361 : vector<2x32xf32>
    %363 = arith.mulf %354, %305 : vector<2x32xf32>
    %364 = arith.mulf %348, %356 : vector<2x32xf32>
    %365 = arith.addf %363, %364 : vector<2x32xf32>
    %366 = math.tanh %365 : vector<2x32xf32>
    %367 = arith.mulf %362, %366 : vector<2x32xf32>
    %368 = vector.shape_cast %342 : vector<2x32xf32> to vector<2x1x32xf32>
    %c0_83 = arith.constant 0 : index
    %c5_84 = arith.constant 5 : index
    %c0_85 = arith.constant 0 : index
    %369 = vector.load %arg9[%c0_83, %c5_84, %c0_85] : memref<2x8x64xf32, #tpu.memory_space<vmem>>, vector<2x1x32xf32>
    tpu.vector_store %arg9[%c0_83, %c5_84, %c0_85], %368 {strides = array<i32>} : memref<2x8x64xf32, #tpu.memory_space<vmem>>, vector<2x1x32xf32>,
    %370 = vector.shape_cast %367 : vector<2x32xf32> to vector<2x1x32xf32>
    %c0_86 = arith.constant 0 : index
    %c2_87 = arith.constant 2 : index
    %c32_88 = arith.constant 32 : index
    %371 = vector.load %arg9[%c0_86, %c2_87, %c32_88] : memref<2x8x64xf32, #tpu.memory_space<vmem>>, vector<2x1x32xf32>
    tpu.vector_store %arg9[%c0_86, %c2_87, %c32_88], %370 {strides = array<i32>} : memref<2x8x64xf32, #tpu.memory_space<vmem>>, vector<2x1x32xf32>,
    %372 = vector.extract_strided_slice %5 {offsets = [12, 0], sizes = [2, 128], strides = [1, 1]} : vector<16x256xf32> to vector<2x128xf32>
    %373 = vector.extract_strided_slice %5 {offsets = [2, 128], sizes = [2, 128], strides = [1, 1]} : vector<16x256xf32> to vector<2x128xf32>
    %cst_89 = arith.constant dense<0.000000e+00> : vector<2x128xf32>
    %374 = tpu.matmul %342, %6, %cst_89 {dimension_numbers = #tpu.dot_dimension_numbers<[1], [0], [0], [1], [0, 0, 1, 1], [], []>} : vector<2x32xf32>, vector<32x128xf32>, vector<2x128xf32> -> vector<2x128xf32>
    %375 = arith.addf %372, %374 : vector<2x128xf32>
    %cst_90 = arith.constant dense<0.000000e+00> : vector<2x128xf32>
    %376 = tpu.matmul %367, %7, %cst_90 {dimension_numbers = #tpu.dot_dimension_numbers<[1], [0], [0], [1], [0, 0, 1, 1], [], []>} : vector<2x32xf32>, vector<32x128xf32>, vector<2x128xf32> -> vector<2x128xf32>
    %377 = arith.addf %373, %376 : vector<2x128xf32>
    %378 = vector.extract_strided_slice %375 {offsets = [0, 0], sizes = [2, 32], strides = [1, 1]} : vector<2x128xf32> to vector<2x32xf32>
    %379 = arith.negf %378 : vector<2x32xf32>
    %380 = math.exp %379 : vector<2x32xf32>
    %cst_91 = arith.constant 1.000000e+00 : f32
    %381 = vector.broadcast %cst_91 : f32 to vector<2x32xf32>
    %382 = arith.addf %381, %380 : vector<2x32xf32>
    %383 = arith.divf %381, %382 : vector<2x32xf32>
    %384 = vector.extract_strided_slice %375 {offsets = [0, 32], sizes = [2, 32], strides = [1, 1]} : vector<2x128xf32> to vector<2x32xf32>
    %385 = arith.negf %384 : vector<2x32xf32>
    %386 = math.exp %385 : vector<2x32xf32>
    %cst_92 = arith.constant 1.000000e+00 : f32
    %387 = vector.broadcast %cst_92 : f32 to vector<2x32xf32>
    %388 = arith.addf %387, %386 : vector<2x32xf32>
    %389 = arith.divf %387, %388 : vector<2x32xf32>
    %390 = vector.extract_strided_slice %375 {offsets = [0, 64], sizes = [2, 32], strides = [1, 1]} : vector<2x128xf32> to vector<2x32xf32>
    %391 = math.tanh %390 : vector<2x32xf32>
    %392 = vector.extract_strided_slice %375 {offsets = [0, 96], sizes = [2, 32], strides = [1, 1]} : vector<2x128xf32> to vector<2x32xf32>
    %393 = arith.negf %392 : vector<2x32xf32>
    %394 = math.exp %393 : vector<2x32xf32>
    %cst_93 = arith.constant 1.000000e+00 : f32
    %395 = vector.broadcast %cst_93 : f32 to vector<2x32xf32>
    %396 = arith.addf %395, %394 : vector<2x32xf32>
    %397 = arith.divf %395, %396 : vector<2x32xf32>
    %398 = arith.mulf %389, %340 : vector<2x32xf32>
    %399 = arith.mulf %383, %391 : vector<2x32xf32>
    %400 = arith.addf %398, %399 : vector<2x32xf32>
    %401 = math.tanh %400 : vector<2x32xf32>
    %402 = arith.mulf %397, %401 : vector<2x32xf32>
    %403 = vector.extract_strided_slice %377 {offsets = [0, 0], sizes = [2, 32], strides = [1, 1]} : vector<2x128xf32> to vector<2x32xf32>
    %404 = arith.negf %403 : vector<2x32xf32>
    %405 = math.exp %404 : vector<2x32xf32>
    %cst_94 = arith.constant 1.000000e+00 : f32
    %406 = vector.broadcast %cst_94 : f32 to vector<2x32xf32>
    %407 = arith.addf %406, %405 : vector<2x32xf32>
    %408 = arith.divf %406, %407 : vector<2x32xf32>
    %409 = vector.extract_strided_slice %377 {offsets = [0, 32], sizes = [2, 32], strides = [1, 1]} : vector<2x128xf32> to vector<2x32xf32>
    %410 = arith.negf %409 : vector<2x32xf32>
    %411 = math.exp %410 : vector<2x32xf32>
    %cst_95 = arith.constant 1.000000e+00 : f32
    %412 = vector.broadcast %cst_95 : f32 to vector<2x32xf32>
    %413 = arith.addf %412, %411 : vector<2x32xf32>
    %414 = arith.divf %412, %413 : vector<2x32xf32>
    %415 = vector.extract_strided_slice %377 {offsets = [0, 64], sizes = [2, 32], strides = [1, 1]} : vector<2x128xf32> to vector<2x32xf32>
    %416 = math.tanh %415 : vector<2x32xf32>
    %417 = vector.extract_strided_slice %377 {offsets = [0, 96], sizes = [2, 32], strides = [1, 1]} : vector<2x128xf32> to vector<2x32xf32>
    %418 = arith.negf %417 : vector<2x32xf32>
    %419 = math.exp %418 : vector<2x32xf32>
    %cst_96 = arith.constant 1.000000e+00 : f32
    %420 = vector.broadcast %cst_96 : f32 to vector<2x32xf32>
    %421 = arith.addf %420, %419 : vector<2x32xf32>
    %422 = arith.divf %420, %421 : vector<2x32xf32>
    %423 = arith.mulf %414, %365 : vector<2x32xf32>
    %424 = arith.mulf %408, %416 : vector<2x32xf32>
    %425 = arith.addf %423, %424 : vector<2x32xf32>
    %426 = math.tanh %425 : vector<2x32xf32>
    %427 = arith.mulf %422, %426 : vector<2x32xf32>
    %428 = vector.shape_cast %402 : vector<2x32xf32> to vector<2x1x32xf32>
    %c0_97 = arith.constant 0 : index
    %c6_98 = arith.constant 6 : index
    %c0_99 = arith.constant 0 : index
    %429 = vector.load %arg9[%c0_97, %c6_98, %c0_99] : memref<2x8x64xf32, #tpu.memory_space<vmem>>, vector<2x1x32xf32>
    tpu.vector_store %arg9[%c0_97, %c6_98, %c0_99], %428 {strides = array<i32>} : memref<2x8x64xf32, #tpu.memory_space<vmem>>, vector<2x1x32xf32>,
    %430 = vector.shape_cast %427 : vector<2x32xf32> to vector<2x1x32xf32>
    %c0_100 = arith.constant 0 : index
    %c1_101 = arith.constant 1 : index
    %c32_102 = arith.constant 32 : index
    %431 = vector.load %arg9[%c0_100, %c1_101, %c32_102] : memref<2x8x64xf32, #tpu.memory_space<vmem>>, vector<2x1x32xf32>
    tpu.vector_store %arg9[%c0_100, %c1_101, %c32_102], %430 {strides = array<i32>} : memref<2x8x64xf32, #tpu.memory_space<vmem>>, vector<2x1x32xf32>,
    %432 = vector.extract_strided_slice %5 {offsets = [14, 0], sizes = [2, 128], strides = [1, 1]} : vector<16x256xf32> to vector<2x128xf32>
    %433 = vector.extract_strided_slice %5 {offsets = [0, 128], sizes = [2, 128], strides = [1, 1]} : vector<16x256xf32> to vector<2x128xf32>
    %cst_103 = arith.constant dense<0.000000e+00> : vector<2x128xf32>
    %434 = tpu.matmul %402, %6, %cst_103 {dimension_numbers = #tpu.dot_dimension_numbers<[1], [0], [0], [1], [0, 0, 1, 1], [], []>} : vector<2x32xf32>, vector<32x128xf32>, vector<2x128xf32> -> vector<2x128xf32>
    %435 = arith.addf %432, %434 : vector<2x128xf32>
    %cst_104 = arith.constant dense<0.000000e+00> : vector<2x128xf32>
    %436 = tpu.matmul %427, %7, %cst_104 {dimension_numbers = #tpu.dot_dimension_numbers<[1], [0], [0], [1], [0, 0, 1, 1], [], []>} : vector<2x32xf32>, vector<32x128xf32>, vector<2x128xf32> -> vector<2x128xf32>
    %437 = arith.addf %433, %436 : vector<2x128xf32>
    %438 = vector.extract_strided_slice %435 {offsets = [0, 0], sizes = [2, 32], strides = [1, 1]} : vector<2x128xf32> to vector<2x32xf32>
    %439 = arith.negf %438 : vector<2x32xf32>
    %440 = math.exp %439 : vector<2x32xf32>
    %cst_105 = arith.constant 1.000000e+00 : f32
    %441 = vector.broadcast %cst_105 : f32 to vector<2x32xf32>
    %442 = arith.addf %441, %440 : vector<2x32xf32>
    %443 = arith.divf %441, %442 : vector<2x32xf32>
    %444 = vector.extract_strided_slice %435 {offsets = [0, 32], sizes = [2, 32], strides = [1, 1]} : vector<2x128xf32> to vector<2x32xf32>
    %445 = arith.negf %444 : vector<2x32xf32>
    %446 = math.exp %445 : vector<2x32xf32>
    %cst_106 = arith.constant 1.000000e+00 : f32
    %447 = vector.broadcast %cst_106 : f32 to vector<2x32xf32>
    %448 = arith.addf %447, %446 : vector<2x32xf32>
    %449 = arith.divf %447, %448 : vector<2x32xf32>
    %450 = vector.extract_strided_slice %435 {offsets = [0, 64], sizes = [2, 32], strides = [1, 1]} : vector<2x128xf32> to vector<2x32xf32>
    %451 = math.tanh %450 : vector<2x32xf32>
    %452 = vector.extract_strided_slice %435 {offsets = [0, 96], sizes = [2, 32], strides = [1, 1]} : vector<2x128xf32> to vector<2x32xf32>
    %453 = arith.negf %452 : vector<2x32xf32>
    %454 = math.exp %453 : vector<2x32xf32>
    %cst_107 = arith.constant 1.000000e+00 : f32
    %455 = vector.broadcast %cst_107 : f32 to vector<2x32xf32>
    %456 = arith.addf %455, %454 : vector<2x32xf32>
    %457 = arith.divf %455, %456 : vector<2x32xf32>
    %458 = arith.mulf %449, %400 : vector<2x32xf32>
    %459 = arith.mulf %443, %451 : vector<2x32xf32>
    %460 = arith.addf %458, %459 : vector<2x32xf32>
    %461 = math.tanh %460 : vector<2x32xf32>
    %462 = arith.mulf %457, %461 : vector<2x32xf32>
    %463 = vector.extract_strided_slice %437 {offsets = [0, 0], sizes = [2, 32], strides = [1, 1]} : vector<2x128xf32> to vector<2x32xf32>
    %464 = arith.negf %463 : vector<2x32xf32>
    %465 = math.exp %464 : vector<2x32xf32>
    %cst_108 = arith.constant 1.000000e+00 : f32
    %466 = vector.broadcast %cst_108 : f32 to vector<2x32xf32>
    %467 = arith.addf %466, %465 : vector<2x32xf32>
    %468 = arith.divf %466, %467 : vector<2x32xf32>
    %469 = vector.extract_strided_slice %437 {offsets = [0, 32], sizes = [2, 32], strides = [1, 1]} : vector<2x128xf32> to vector<2x32xf32>
    %470 = arith.negf %469 : vector<2x32xf32>
    %471 = math.exp %470 : vector<2x32xf32>
    %cst_109 = arith.constant 1.000000e+00 : f32
    %472 = vector.broadcast %cst_109 : f32 to vector<2x32xf32>
    %473 = arith.addf %472, %471 : vector<2x32xf32>
    %474 = arith.divf %472, %473 : vector<2x32xf32>
    %475 = vector.extract_strided_slice %437 {offsets = [0, 64], sizes = [2, 32], strides = [1, 1]} : vector<2x128xf32> to vector<2x32xf32>
    %476 = math.tanh %475 : vector<2x32xf32>
    %477 = vector.extract_strided_slice %437 {offsets = [0, 96], sizes = [2, 32], strides = [1, 1]} : vector<2x128xf32> to vector<2x32xf32>
    %478 = arith.negf %477 : vector<2x32xf32>
    %479 = math.exp %478 : vector<2x32xf32>
    %cst_110 = arith.constant 1.000000e+00 : f32
    %480 = vector.broadcast %cst_110 : f32 to vector<2x32xf32>
    %481 = arith.addf %480, %479 : vector<2x32xf32>
    %482 = arith.divf %480, %481 : vector<2x32xf32>
    %483 = arith.mulf %474, %425 : vector<2x32xf32>
    %484 = arith.mulf %468, %476 : vector<2x32xf32>
    %485 = arith.addf %483, %484 : vector<2x32xf32>
    %486 = math.tanh %485 : vector<2x32xf32>
    %487 = arith.mulf %482, %486 : vector<2x32xf32>
    %488 = vector.shape_cast %462 : vector<2x32xf32> to vector<2x1x32xf32>
    %c0_111 = arith.constant 0 : index
    %c7_112 = arith.constant 7 : index
    %c0_113 = arith.constant 0 : index
    %489 = vector.load %arg9[%c0_111, %c7_112, %c0_113] : memref<2x8x64xf32, #tpu.memory_space<vmem>>, vector<2x1x32xf32>
    tpu.vector_store %arg9[%c0_111, %c7_112, %c0_113], %488 {strides = array<i32>} : memref<2x8x64xf32, #tpu.memory_space<vmem>>, vector<2x1x32xf32>,
    %490 = vector.shape_cast %487 : vector<2x32xf32> to vector<2x1x32xf32>
    %c0_114 = arith.constant 0 : index
    %c0_115 = arith.constant 0 : index
    %c32_116 = arith.constant 32 : index
    %491 = vector.load %arg9[%c0_114, %c0_115, %c32_116] : memref<2x8x64xf32, #tpu.memory_space<vmem>>, vector<2x1x32xf32>
    tpu.vector_store %arg9[%c0_114, %c0_115, %c32_116], %490 {strides = array<i32>} : memref<2x8x64xf32, #tpu.memory_space<vmem>>, vector<2x1x32xf32>,
    %492 = vector.extract_strided_slice %462 {offsets = [0, 0], sizes = [1, 32], strides = [1, 1]} : vector<2x32xf32> to vector<1x32xf32>
    %c0_117 = arith.constant 0 : index
    %c0_118 = arith.constant 0 : index
    %493 = vector.load %arg10[%c0_117, %c0_118] : memref<2x64xf32, #tpu.memory_space<vmem>>, vector<1x32xf32>
    tpu.vector_store %arg10[%c0_117, %c0_118], %492 {strides = array<i32>} : memref<2x64xf32, #tpu.memory_space<vmem>>, vector<1x32xf32>,
    %494 = vector.extract_strided_slice %462 {offsets = [1, 0], sizes = [1, 32], strides = [1, 1]} : vector<2x32xf32> to vector<1x32xf32>
    %c0_119 = arith.constant 0 : index
    %c32_120 = arith.constant 32 : index
    %495 = vector.load %arg10[%c0_119, %c32_120] : memref<2x64xf32, #tpu.memory_space<vmem>>, vector<1x32xf32>
    tpu.vector_store %arg10[%c0_119, %c32_120], %494 {strides = array<i32>} : memref<2x64xf32, #tpu.memory_space<vmem>>, vector<1x32xf32>,
    %496 = vector.extract_strided_slice %487 {offsets = [0, 0], sizes = [1, 32], strides = [1, 1]} : vector<2x32xf32> to vector<1x32xf32>
    %c1_121 = arith.constant 1 : index
    %c0_122 = arith.constant 0 : index
    %497 = vector.load %arg10[%c1_121, %c0_122] : memref<2x64xf32, #tpu.memory_space<vmem>>, vector<1x32xf32>
    tpu.vector_store %arg10[%c1_121, %c0_122], %496 {strides = array<i32>} : memref<2x64xf32, #tpu.memory_space<vmem>>, vector<1x32xf32>,
    %498 = vector.extract_strided_slice %487 {offsets = [1, 0], sizes = [1, 32], strides = [1, 1]} : vector<2x32xf32> to vector<1x32xf32>
    %c1_123 = arith.constant 1 : index
    %c32_124 = arith.constant 32 : index
    %499 = vector.load %arg10[%c1_123, %c32_124] : memref<2x64xf32, #tpu.memory_space<vmem>>, vector<1x32xf32>
    tpu.vector_store %arg10[%c1_123, %c32_124], %498 {strides = array<i32>} : memref<2x64xf32, #tpu.memory_space<vmem>>, vector<1x32xf32>,
    %c0_125 = arith.constant 0 : index
    %c0_126 = arith.constant 0 : index
    %c0_127 = arith.constant 0 : index
    %500 = vector.load %arg9[%c0_125, %c0_126, %c0_127] : memref<2x8x64xf32, #tpu.memory_space<vmem>>, vector<2x8x64xf32>
    %c0_128 = arith.constant 0 : index
    %c0_129 = arith.constant 0 : index
    %501 = vector.load %arg10[%c0_128, %c0_129] : memref<2x64xf32, #tpu.memory_space<vmem>>, vector<2x64xf32>
    %502 = vector.shape_cast %501 : vector<2x64xf32> to vector<2x1x64xf32>
    "tpu.trace_start"() <{level = 10 : i32, message = "blk,bsk->bls"}> : () -> ()
    %cst_130 = arith.constant dense<0.000000e+00> : vector<2x1x8xf32>
    %503 = tpu.matmul %502, %500, %cst_130 {dimension_numbers = #tpu.dot_dimension_numbers<[2], [2], [1], [1], [0, 0, 0, 1, 1, 1], [0], [0]>} : vector<2x1x64xf32>, vector<2x8x64xf32>, vector<2x1x8xf32> -> vector<2x1x8xf32>
    "tpu.trace_stop"() : () -> ()
    %cst_131 = arith.constant dense<0xFF800000> : vector<2x1xf32>
    %504 = vector.multi_reduction <maximumf>, %503, %cst_131 [2] : vector<2x1x8xf32> to vector<2x1xf32>
    %505 = vector.shape_cast %504 : vector<2x1xf32> to vector<2x1x1xf32>
    %506 = vector.broadcast %505 : vector<2x1x1xf32> to vector<2x1x8xf32>
    %507 = arith.subf %503, %506 : vector<2x1x8xf32>
    %508 = math.exp %507 : vector<2x1x8xf32>
    %cst_132 = arith.constant dense<0.000000e+00> : vector<2x1xf32>
    %509 = vector.multi_reduction <add>, %508, %cst_132 [2] : vector<2x1x8xf32> to vector<2x1xf32>
    %510 = vector.shape_cast %509 : vector<2x1xf32> to vector<2x1x1xf32>
    %511 = tpu.reciprocal %510 : vector<2x1x1xf32> -> vector<2x1x1xf32>
    %512 = vector.broadcast %511 : vector<2x1x1xf32> to vector<2x1x8xf32>
    %513 = arith.mulf %508, %512 : vector<2x1x8xf32>
    "tpu.trace_start"() <{level = 10 : i32, message = "bls,bsk->blk"}> : () -> ()
    %cst_133 = arith.constant dense<0.000000e+00> : vector<2x1x64xf32>
    %514 = tpu.matmul %513, %500, %cst_133 {dimension_numbers = #tpu.dot_dimension_numbers<[2], [1], [1], [2], [0, 0, 0, 1, 1, 2], [0], [0]>} : vector<2x1x8xf32>, vector<2x8x64xf32>, vector<2x1x64xf32> -> vector<2x1x64xf32>
    "tpu.trace_stop"() : () -> ()
    %c0_134 = arith.constant 0 : index
    %c0_135 = arith.constant 0 : index
    %515 = vector.load %arg5[%c0_134, %c0_135] : memref<64x4xf32, #tpu.memory_space<vmem>>, vector<64x4xf32>
    %516 = vector.shape_cast %515 : vector<64x4xf32> to vector<1x64x4xf32>
    %517 = vector.shape_cast %516 : vector<1x64x4xf32> to vector<1x64x4xf32>
    %518 = vector.broadcast %517 : vector<1x64x4xf32> to vector<2x64x4xf32>
    "tpu.trace_start"() <{level = 10 : i32, message = "blk,bkc->blc"}> : () -> ()
    %cst_136 = arith.constant dense<0.000000e+00> : vector<2x1x4xf32>
    %519 = tpu.matmul %514, %518, %cst_136 {dimension_numbers = #tpu.dot_dimension_numbers<[2], [1], [1], [2], [0, 0, 0, 1, 1, 2], [0], [0]>} : vector<2x1x64xf32>, vector<2x64x4xf32>, vector<2x1x4xf32> -> vector<2x1x4xf32>
    "tpu.trace_stop"() : () -> ()
    %c0_137 = arith.constant 0 : index
    %c0_138 = arith.constant 0 : index
    %520 = vector.load %arg6[%c0_137, %c0_138] : memref<1x4xf32, #tpu.memory_space<vmem>>, vector<1x4xf32>
    %521 = vector.shape_cast %520 : vector<1x4xf32> to vector<1x1x4xf32>
    %522 = vector.broadcast %521 : vector<1x1x4xf32> to vector<2x1x4xf32>
    %523 = arith.addf %519, %522 : vector<2x1x4xf32>
    %524 = vector.extract_strided_slice %523 {offsets = [0, 0, 0], sizes = [1, 1, 4], strides = [1, 1, 1]} : vector<2x1x4xf32> to vector<1x1x4xf32>
    %525 = vector.shape_cast %524 : vector<1x1x4xf32> to vector<1x4xf32>
    %c0_139 = arith.constant 0 : index
    %c0_140 = arith.constant 0 : index
    %526 = vector.load %arg7[%c0_139, %c0_140] : memref<2x4xf32, #tpu.memory_space<vmem>>, vector<1x4xf32>
    tpu.vector_store %arg7[%c0_139, %c0_140], %525 {strides = array<i32>} : memref<2x4xf32, #tpu.memory_space<vmem>>, vector<1x4xf32>,
    %527 = vector.extract_strided_slice %513 {offsets = [0, 0, 0], sizes = [1, 1, 8], strides = [1, 1, 1]} : vector<2x1x8xf32> to vector<1x1x8xf32>
    %528 = vector.shape_cast %527 : vector<1x1x8xf32> to vector<1x8xf32>
    %c0_141 = arith.constant 0 : index
    %c0_142 = arith.constant 0 : index
    %529 = vector.load %arg8[%c0_141, %c0_142] : memref<2x8xf32, #tpu.memory_space<vmem>>, vector<1x8xf32>
    tpu.vector_store %arg8[%c0_141, %c0_142], %528 {strides = array<i32>} : memref<2x8xf32, #tpu.memory_space<vmem>>, vector<1x8xf32>,
    %530 = vector.extract_strided_slice %523 {offsets = [1, 0, 0], sizes = [1, 1, 4], strides = [1, 1, 1]} : vector<2x1x4xf32> to vector<1x1x4xf32>
    %531 = vector.shape_cast %530 : vector<1x1x4xf32> to vector<1x4xf32>
    %c1_143 = arith.constant 1 : index
    %c0_144 = arith.constant 0 : index
    %532 = vector.load %arg7[%c1_143, %c0_144] : memref<2x4xf32, #tpu.memory_space<vmem>>, vector<1x4xf32>
    tpu.vector_store %arg7[%c1_143, %c0_144], %531 {strides = array<i32>} : memref<2x4xf32, #tpu.memory_space<vmem>>, vector<1x4xf32>,
    %533 = vector.extract_strided_slice %513 {offsets = [1, 0, 0], sizes = [1, 1, 8], strides = [1, 1, 1]} : vector<2x1x8xf32> to vector<1x1x8xf32>
    %534 = vector.shape_cast %533 : vector<1x1x8xf32> to vector<1x8xf32>
    %c1_145 = arith.constant 1 : index
    %c0_146 = arith.constant 0 : index
    %535 = vector.load %arg8[%c1_145, %c0_146] : memref<2x8xf32, #tpu.memory_space<vmem>>, vector<1x8xf32>
    tpu.vector_store %arg8[%c1_145, %c0_146], %534 {strides = array<i32>} : memref<2x8xf32, #tpu.memory_space<vmem>>, vector<1x8xf32>,
    return
  }
}

</mosaic_0001>

<bundles_post_ra>
// kernel: bilstm_attention_forward.1
= control target key start
LH: loop header
LB: loop body
LE: loop exit
PB: predicated region body
PF: predicated region fallthrough
CT: control target
= control target key end

     0   :  { %14 = vsyncpa [#allocation5], 0  ;;  %v3710_v3 = vmov 0.0|0.0   ;;  %v3711_v8 = vmov 0.0   ;;  %vm3712_vm0 = vmmov 0   ;;  %vm48_vm1 = vcmask 130048   ;;  %s4397_s0 = inlined_call_operand.vmem [shape: f32[16,16], index: 0, kind: input, shape index: {}]   ;;  %s4398_s1 = inlined_call_operand.vmem [shape: f32[16,256], index: 1, kind: input, shape index: {}]   ;;  %s4399_s2 = inlined_call_operand.vmem [shape: f32[32,128], index: 2, kind: input, shape index: {}]   ;;  %s4400_s3 = inlined_call_operand.vmem [shape: f32[32,128], index: 3, kind: input, shape index: {}]   ;;  %s4401_s4 = inlined_call_operand.vmem [shape: f32[1,256], index: 4, kind: input, shape index: {}]   ;;  %s4402_s5 = inlined_call_operand.vmem [shape: f32[64,4], index: 5, kind: input, shape index: {}]   ;;  %s4403_s6 = inlined_call_operand.vmem [shape: f32[1,4], index: 6, kind: input, shape index: {}]   ;;  %s4404_s7 = inlined_call_operand.hbm [shape: f32[2,4], index: 7, kind: output, shape index: {0}]   ;;  %s4405_s8 = inlined_call_operand.hbm [shape: f32[2,8], index: 8, kind: output, shape index: {1}]  }
   0x1   :  { %v33_v0 = vld [vmem:[%s4398_s1 + $0x8] sm:$0xff]  ;;  %v35_v1 = vld [vmem:[%s4398_s1 + $0x18] sm:$0xff]  ;;  %v132_v2 = vld [vmem:[%s4399_s2] sm:$0xff]  ;;  %3398 = vmatprep.subr.bf16.mxu1 %v3710_v3  ;;  %119 = vmatprep.mubr.f32.mxu0 %v3711_v8 }
   0x2   :  { %v3394_v4 = vpack.c.bf16 %v35_v1, %v33_v0  ;;  %v133_v5 = vld [vmem:[%s4399_s2 + $0x8] sm:$0xff]  ;;  %v32_v6 = vld [vmem:[%s4398_s1] sm:$0xff]  ;;  %v34_v7 = vld [vmem:[%s4398_s1 + $0x10] sm:$0xff]  ;;  %3168 = vmatprep.mubr.msk.f32.mxu1 %vm3712_vm0, %v3711_v8 }
   0x3   :  { %v3783_v9 = vpack.c.bf16 %v133_v5, %v132_v2  ;;  %v3396_v10 = vpack.c.bf16 %v34_v7, %v32_v6  ;;  %v134_v11 = vld [vmem:[%s4399_s2 + $0x10] sm:$0xff]  ;;  %v135_v12 = vld [vmem:[%s4399_s2 + $0x18] sm:$0xff]  ;;  %v136_v13 = vld [vmem:[%s4400_s3] sm:$0xff] }
   0x4   :  { %3395 = vmatprep.subr.bf16.mxu0 %v3394_v4  ;;  %v137_v14 = vld [vmem:[%s4400_s3 + $0x8] sm:$0xff]  ;;  %v30_v15 = vld [vmem:[%s4397_s0] sm:$0xff]  ;;  %v3803_v16 = vpack.c.bf16 %v135_v12, %v134_v11  ;;  %v138_v18 = vld [vmem:[%s4400_s3 + $0x10] sm:$0xff] }
   0x5   :  { %3400 = vmatpush3.bf16.msra.mxu1 %v3783_v9  ;;  %3397 = vmatpush1.bf16.msra.mxu0 %v3396_v10  ;;  %v3805_v17 = vpack.c.bf16 %v137_v14, %v136_v13  ;;  %v139_v19 = vld [vmem:[%s4400_s3 + $0x18] sm:$0xff] }
   0x6   :  { %3401 = vmatprep.subr.bf16.mxu1 %v3710_v3  ;;  %3404 = vmatprep.subr.bf16.mxu0 %v3710_v3 }
   0x7   :  { %15 = vsyncpa [#allocation7], 0  ;;  %v31_v20 = vld [vmem:[%s4397_s0 + $0x8] sm:$0xff]  ;;  %v3821_v21 = vpack.c.bf16 %v139_v19, %v138_v18  ;;  %v38_v22 = vlaneseq  ;;  %v36_v25 = vld [vmem:[%s4401_s4] sm:$0x3]  ;;  %s3713_s4 = smov 64  }
   0x8   :  { %3013 = vmatmul.mubr.msk.f32.vlgmr.msra.gmra.mrb[0].mxu0 %vm48_vm1, %v30_v15  ;;  %s3714_s9 = smov 32   ;;  %vm140_vm2 = vcmask 261120   ;;  %vm374_vm3 = vcmask 253952   ;;  %vm417_vm4 = vcmask 516352   ;;  %vm2462_vm5 = vcmask 260102  }
   0x9   :  { %3403 = vmatpush3.bf16.msra.mxu1 %v3803_v16  ;;  %3406 = vmatpush3.bf16.msra.mxu0 %v3805_v17  ;;  %v3845_v23 = vshrl.u32 %v38_v22, 7  ;;  %vm2467_vm6 = vcmask 523527   ;;  %vm2476_vm7 = vcmask 517377   ;;  %vm2504_vm8 = vcmask 523264  }
   0xa   :  { %125 = vmatprep.mubr.f32.mxu0 %v3711_v8  ;;  %3407 = vmatprep.subr.bf16.mxu0 %v3710_v3  ;;  %vm2655_vm9 = vcmask 57344   ;;  %vm2678_vm10 = vcmask 64512  }
   0xb   :  { %3410 = vmatprep.subr.bf16.mxu1 %v3710_v3  ;;  %v3848_v24 = vsub.s32 0, %v3845_v23  ;;  %v44_v26 = vsub.s32 1, %v3845_v23 }
   0xc   :  { %3169 = vmatmul.mubr.f32.vlgmr.msra.gmra.mrb[0].mxu1 %v3711_v8  ;;  %3014 = vmatmul.mubr.msk.f32.gmra.mrb[2].mxu0 %vm48_vm1, %v31_v20 }
   0xd   :  { %3409 = vmatpush3.bf16.msra.mxu0 %v3821_v21  ;;  %3179 = vmatprep.mubr.msk.f32.mxu0 %vm3712_vm0, %v3711_v8  ;;  %v41_v27 = vrot.slane %v36_v25, %v3848_v24  ;;  %v45_v28 = vrot.slane %v36_v25, %v44_v26 }
   0xe   :  { %3412 = vmatpush3.bf16.msra.mxu1 %v3783_v9  ;;  %3190 = vmatprep.mubr.msk.f32.mxu1 %vm3712_vm0, %v3711_v8 }
   0xf   :  { %3413 = vmatprep.subr.bf16.mxu1 %v3710_v3  ;;  %3416 = vmatprep.subr.bf16.mxu0 %v3710_v3 }
  0x10   :  { %3180 = vmatmul.mubr.f32.vlgmr.msra.gmra.mrb[4].mxu0 %v3711_v8 }
  0x11   :  { %3418 = vmatpush3.bf16.msra.mxu0 %v3805_v17  ;;  %3201 = vmatprep.mubr.msk.f32.mxu0 %vm3712_vm0, %v3711_v8 }
  0x12   :  { %3415 = vmatpush3.bf16.msra.mxu1 %v3803_v16  ;;  %3419 = vmatprep.subr.bf16.mxu0 %v3710_v3 }
  0x13   :  { %3422 = vmatprep.subr.bf16.mxu1 %v3710_v3 }
  0x15   :  { %3421 = vmatpush3.bf16.msra.mxu0 %v3821_v21 }
  0x16   :  { %3428 = vmatprep.subr.bf16.mxu0 %v3710_v3 }
  0xdb   :  { %v121_v29 = vpop.f32.mrb[0].mxu0 }
  0xdc   :  { %v3855_v30 = vadd.f32 %v121_v29, %v41_v27  ;;  %v123_v31 = vpop.f32.mrb[1].mxu0 }
  0xdd   :  { %v3857_v32 = vadd.f32 %v123_v31, %v45_v28 }
  0xdf   :  { %v210_v33 = vpop.f32.mrb[0].mxu1  ;;  %v127_v34 = vpop.f32.mrb[2].mxu0 }
  0xe0   :  { %v214_v35 = vadd.f32 %v210_v33, %v3855_v30  ;;  %v3860_v36 = vadd.f32 %v127_v34, %v41_v27  ;;  %v3170_v37 = vpop.f32.mrb[1].mxu1  ;;  %v129_v38 = vpop.f32.mrb[3].mxu0 }
  0xe1   :  { %v3862_v40 = vadd.f32 %v129_v38, %v45_v28 }
  0xe2   :  { %3526 = vtanh.f32 %v214_v35  ;;  %v3015_v46 = vmul.f32 -1.442695, %v214_v35 }
  0xe3   :  { %v281_v39 = vpop.f32.mrb[4].mxu0 }
  0xe4   :  { %v286_v41 = vrot.slane %v281_v39, 2  ;;  %v3181_v42 = vpop.f32.mrb[5].mxu0 }
  0xe6   :  { %v288_v43 = vadd.f32 %v286_v41, %v3862_v40 }
  0xe8   :  { %3528 = vtanh.f32 %v288_v43  ;;  %v3016_v47 = vmul.f32 -1.442695, %v288_v43 }
  0xe9   :  { %3530 = vpow2.f32 %v3015_v46 }
  0xea   :  { %3532 = vpow2.f32 %v3016_v47 }
  0xec   :  { %v3527_v44 = vpop.eup %3526 }
  0xed   :  { %298 = vrot.lane.b32.xlu0 %v3527_v44, %s3713_s4 }
  0xf2   :  { %v3529_v45 = vpop.eup %3528 }
  0xf3   :  { %322 = vrot.lane.b32.xlu0 %v3529_v45, %s3713_s4  ;;  %v3531_v48 = vpop.eup %3530 }
  0xf4   :  { %v292_v49 = vadd.f32 1.0, %v3531_v48  ;;  %v3533_v50 = vpop.eup %3532 }
  0xf5   :  { %v316_v51 = vadd.f32 1.0, %v3533_v50 }
  0xf6   :  { %3534 = vrcp.f32 %v292_v49 }
  0xf7   :  { %3536 = vrcp.f32 %v316_v51 }
 0x100   :  { %v3535_v52 = vpop.eup %3534 }
 0x101   :  { %v3537_v55 = vpop.eup %3536  ;;  %v296_v58 = vmul.f32 0.0, %v3535_v52 }
 0x102   :  { %v320_v61 = vmul.f32 0.0, %v3537_v55 }
 0x15f   :  { %v299_v53 = vpop.permute.xlu0 %298 }
 0x160   :  { %v301_v54 = vmul.f32 %v3535_v52, %v299_v53 }
 0x162   :  { %303 = vrot.lane.b32.xlu1 %v301_v54, %s3714_s9 }
 0x165   :  { %v323_v56 = vpop.permute.xlu0 %322 }
 0x166   :  { %v325_v57 = vmul.f32 %v3537_v55, %v323_v56 }
 0x168   :  { %327 = vrot.lane.b32.xlu1 %v325_v57, %s3714_s9 }
 0x1d4   :  { %v304_v59 = vpop.permute.xlu1 %303 }
 0x1d5   :  { %v3869_v60 = vadd.f32 %v304_v59, %v296_v58 }
 0x1d7   :  { %3538 = vtanh.f32 %v3869_v60  ;;  %v585_v43 = vrot.slane %v3869_v60, 6 }
 0x1da   :  { %v328_v62 = vpop.permute.xlu1 %327 }
 0x1db   :  { %v3872_v63 = vadd.f32 %v328_v62, %v320_v61 }
 0x1dd   :  { %3540 = vtanh.f32 %v3872_v63  ;;  %v612_v47 = vrot.slane %v3872_v63, 2 }
 0x1e1   :  { %v3539_v0 = vpop.eup %3538 }
 0x1e2   :  { %309 = vrot.lane.b32.xlu0 %v3539_v0, %s3713_s4 }
 0x1e7   :  { %v3541_v1 = vpop.eup %3540 }
 0x1e8   :  { %333 = vrot.lane.b32.xlu1 %v3541_v1, %s3713_s4 }
 0x254   :  { %v310_v2 = vpop.permute.xlu0 %309 }
 0x255   :  { %v3877_v4 = vmul.f32 %v3535_v52, %v310_v2 }
 0x257   :  { %420 = vrot.lane.b32.xlu0 %v3877_v4, %s3714_s9 }
 0x25a   :  { %v334_v5 = vpop.permute.xlu1 %333 }
 0x25b   :  { %v3881_v6 = vmul.f32 %v3537_v55, %v334_v5 }
 0x25d   :  { %v498_v7 = vrot.slane %v3881_v6, 6 }
 0x25f   :  { %499 = vrot.lane.b32.xlu1 %v498_v7, %s3714_s9 }
 0x2c9   :  { %v421_v10 = vpop.permute.xlu0 %420 }
 0x2ca   :  { %3191 = vmatmul.mubr.msk.f32.vlgmr.msra.gmra.mrb[2].mxu1 %vm140_vm2, %v421_v10 }
 0x2cb   :  { %3424 = vmatpush3.bf16.msra.mxu1 %v3783_v9  ;;  %3212 = vmatprep.mubr.msk.f32.mxu1 %vm3712_vm0, %v3711_v8 }
 0x2cc   :  { %3425 = vmatprep.subr.bf16.mxu1 %v3710_v3 }
 0x2cf   :  { %3427 = vmatpush3.bf16.msra.mxu1 %v3803_v16 }
 0x2d0   :  { %3434 = vmatprep.subr.bf16.mxu1 %v3710_v3 }
 0x2d1   :  { %v500_v11 = vpop.permute.xlu1 %499 }
 0x2d2   :  { %3202 = vmatmul.mubr.msk.f32.vlgmr.msra.gmra.mrb[6].mxu0 %vm140_vm2, %v500_v11 }
 0x2d3   :  { %3430 = vmatpush3.bf16.msra.mxu0 %v3805_v17  ;;  %3223 = vmatprep.mubr.msk.f32.mxu0 %vm3712_vm0, %v3711_v8 }
 0x2d4   :  { %3431 = vmatprep.subr.bf16.mxu0 %v3710_v3 }
 0x2d7   :  { %3433 = vmatpush3.bf16.msra.mxu0 %v3821_v21 }
 0x2d8   :  { %3440 = vmatprep.subr.bf16.mxu0 %v3710_v3 }
 0x39d   :  { %v490_v12 = vpop.f32.mrb[2].mxu1 }
 0x39e   :  { %v495_v13 = vrot.slane %v490_v12, 6  ;;  %v3192_v14 = vpop.f32.mrb[3].mxu1 }
 0x3a0   :  { %v497_v15 = vadd.f32 %v495_v13, %v3855_v30 }
 0x3a2   :  { %3542 = vtanh.f32 %v497_v15  ;;  %v3019_v27 = vmul.f32 -1.442695, %v497_v15 }
 0x3a5   :  { %v569_v18 = vpop.f32.mrb[6].mxu0 }
 0x3a6   :  { %v574_v19 = vrot.slane %v569_v18, 4  ;;  %v3203_v20 = vpop.f32.mrb[7].mxu0 }
 0x3a8   :  { %v576_v22 = vadd.f32 %v574_v19, %v3862_v40 }
 0x3aa   :  { %3544 = vtanh.f32 %v576_v22  ;;  %v3020_v28 = vmul.f32 -1.442695, %v576_v22 }
 0x3ab   :  { %3546 = vpow2.f32 %v3019_v27 }
 0x3ac   :  { %v3543_v25 = vpop.eup %3542  ;;  %3548 = vpow2.f32 %v3020_v28 }
 0x3ad   :  { %589 = vrot.lane.b32.xlu0 %v3543_v25, %s3713_s4 }
 0x3b4   :  { %v3545_v26 = vpop.eup %3544 }
 0x3b5   :  { %616 = vrot.lane.b32.xlu1 %v3545_v26, %s3713_s4  ;;  %v3547_v29 = vpop.eup %3546 }
 0x3b6   :  { %v580_v31 = vadd.f32 1.0, %v3547_v29  ;;  %v3549_v33 = vpop.eup %3548 }
 0x3b7   :  { %v607_v34 = vadd.f32 1.0, %v3549_v33 }
 0x3b8   :  { %3550 = vrcp.f32 %v580_v31 }
 0x3b9   :  { %3552 = vrcp.f32 %v607_v34 }
 0x3c2   :  { %v3551_v35 = vpop.eup %3550 }
 0x3c3   :  { %v3553_v39 = vpop.eup %3552  ;;  %v587_v44 = vmul.f32 %v3551_v35, %v585_v43 }
 0x3c4   :  { %v614_v48 = vmul.f32 %v3553_v39, %v612_v47 }
 0x41f   :  { %v590_v37 = vpop.permute.xlu0 %589 }
 0x420   :  { %v592_v38 = vmul.f32 %v3551_v35, %v590_v37 }
 0x422   :  { %594 = vrot.lane.b32.xlu0 %v592_v38, %s3714_s9 }
 0x427   :  { %v617_v41 = vpop.permute.xlu1 %616 }
 0x428   :  { %v619_v42 = vmul.f32 %v3553_v39, %v617_v41 }
 0x42a   :  { %621 = vrot.lane.b32.xlu1 %v619_v42, %s3714_s9 }
 0x494   :  { %v595_v45 = vpop.permute.xlu0 %594 }
 0x495   :  { %v3906_v46 = vadd.f32 %v595_v45, %v587_v44 }
 0x497   :  { %3554 = vtanh.f32 %v3906_v46  ;;  %v878_v29 = vrot.slane %v3906_v46, 6 }
 0x49c   :  { %v622_v49 = vpop.permute.xlu1 %621 }
 0x49d   :  { %v3910_v50 = vadd.f32 %v622_v49, %v614_v48 }
 0x49f   :  { %3556 = vtanh.f32 %v3910_v50 }
 0x4a1   :  { %v3555_v51 = vpop.eup %3554 }
 0x4a2   :  { %600 = vrot.lane.b32.xlu0 %v3555_v51, %s3713_s4 }
 0x4a9   :  { %v3557_v52 = vpop.eup %3556 }
 0x4aa   :  { %627 = vrot.lane.b32.xlu1 %v3557_v52, %s3713_s4 }
 0x514   :  { %v601_v53 = vpop.permute.xlu0 %600 }
 0x515   :  { %v3915_v54 = vmul.f32 %v3551_v35, %v601_v53  ;;  %v905_v35 = vrot.slane %v3910_v50, 2 }
 0x517   :  { %v712_v55 = vrot.slane %v3915_v54, 2 }
 0x519   :  { %713 = vrot.lane.b32.xlu0 %v712_v55, %s3714_s9 }
 0x51c   :  { %v628_v56 = vpop.permute.xlu1 %627 }
 0x51d   :  { %v3919_v57 = vmul.f32 %v3553_v39, %v628_v56 }
 0x51f   :  { %v791_v58 = vrot.slane %v3919_v57, 4 }
 0x521   :  { %792 = vrot.lane.b32.xlu1 %v791_v58, %s3714_s9 }
 0x58b   :  { %v714_v59 = vpop.permute.xlu0 %713 }
 0x58c   :  { %3213 = vmatmul.mubr.msk.f32.vlgmr.msra.gmra.mrb[4].mxu1 %vm140_vm2, %v714_v59 }
 0x58d   :  { %3436 = vmatpush3.bf16.msra.mxu1 %v3783_v9  ;;  %3234 = vmatprep.mubr.msk.f32.mxu1 %vm3712_vm0, %v3711_v8 }
 0x58e   :  { %3437 = vmatprep.subr.bf16.mxu1 %v3710_v3 }
 0x591   :  { %3439 = vmatpush3.bf16.msra.mxu1 %v3803_v16 }
 0x592   :  { %3446 = vmatprep.subr.bf16.mxu1 %v3710_v3 }
 0x593   :  { %v793_v60 = vpop.permute.xlu1 %792 }
 0x594   :  { %3224 = vmatmul.mubr.msk.f32.vlgmr.msra.gmra.mrb[8].mxu0 %vm140_vm2, %v793_v60 }
 0x595   :  { %3442 = vmatpush3.bf16.msra.mxu0 %v3805_v17  ;;  %3245 = vmatprep.mubr.msk.f32.mxu0 %vm3712_vm0, %v3711_v8 }
 0x596   :  { %3443 = vmatprep.subr.bf16.mxu0 %v3710_v3 }
 0x599   :  { %3445 = vmatpush3.bf16.msra.mxu0 %v3821_v21 }
 0x59a   :  { %3452 = vmatprep.subr.bf16.mxu0 %v3710_v3 }
 0x65f   :  { %v783_v61 = vpop.f32.mrb[4].mxu1 }
 0x660   :  { %v788_v62 = vrot.slane %v783_v61, 4  ;;  %v3214_v63 = vpop.f32.mrb[5].mxu1 }
 0x662   :  { %v790_v0 = vadd.f32 %v788_v62, %v3855_v30 }
 0x664   :  { %3558 = vtanh.f32 %v790_v0  ;;  %v3023_v12 = vmul.f32 -1.442695, %v790_v0 }
 0x667   :  { %v862_v1 = vpop.f32.mrb[8].mxu0 }
 0x668   :  { %v867_v2 = vrot.slane %v862_v1, 6  ;;  %v3225_v5 = vpop.f32.mrb[9].mxu0 }
 0x66a   :  { %v869_v7 = vadd.f32 %v867_v2, %v3862_v40 }
 0x66c   :  { %3560 = vtanh.f32 %v869_v7  ;;  %v3024_v13 = vmul.f32 -1.442695, %v869_v7 }
 0x66d   :  { %3562 = vpow2.f32 %v3023_v12 }
 0x66e   :  { %v3559_v10 = vpop.eup %3558  ;;  %3564 = vpow2.f32 %v3024_v13 }
 0x66f   :  { %882 = vrot.lane.b32.xlu0 %v3559_v10, %s3713_s4 }
 0x676   :  { %v3561_v11 = vpop.eup %3560 }
 0x677   :  { %909 = vrot.lane.b32.xlu1 %v3561_v11, %s3713_s4  ;;  %v3563_v14 = vpop.eup %3562 }
 0x678   :  { %v873_v15 = vadd.f32 1.0, %v3563_v14  ;;  %v3565_v18 = vpop.eup %3564 }
 0x679   :  { %v900_v19 = vadd.f32 1.0, %v3565_v18 }
 0x67a   :  { %3566 = vrcp.f32 %v873_v15 }
 0x67b   :  { %3568 = vrcp.f32 %v900_v19 }
 0x684   :  { %v3567_v20 = vpop.eup %3566 }
 0x685   :  { %v3569_v26 = vpop.eup %3568  ;;  %v880_v31 = vmul.f32 %v3567_v20, %v878_v29 }
 0x686   :  { %v907_v37 = vmul.f32 %v3569_v26, %v905_v35 }
 0x6e1   :  { %v883_v22 = vpop.permute.xlu0 %882 }
 0x6e2   :  { %v885_v25 = vmul.f32 %v3567_v20, %v883_v22 }
 0x6e4   :  { %887 = vrot.lane.b32.xlu0 %v885_v25, %s3714_s9 }
 0x6e9   :  { %v910_v27 = vpop.permute.xlu1 %909 }
 0x6ea   :  { %v912_v28 = vmul.f32 %v3569_v26, %v910_v27 }
 0x6ec   :  { %914 = vrot.lane.b32.xlu1 %v912_v28, %s3714_s9 }
 0x756   :  { %v888_v33 = vpop.permute.xlu0 %887 }
 0x757   :  { %v3944_v34 = vadd.f32 %v888_v33, %v880_v31 }
 0x759   :  { %3570 = vtanh.f32 %v3944_v34  ;;  %v1168_v13 = vrot.slane %v3944_v34, 6 }
 0x75e   :  { %v915_v38 = vpop.permute.xlu1 %914 }
 0x75f   :  { %v3948_v39 = vadd.f32 %v915_v38, %v907_v37 }
 0x761   :  { %3572 = vtanh.f32 %v3948_v39  ;;  %v1195_v19 = vrot.slane %v3948_v39, 2 }
 0x763   :  { %v3571_v41 = vpop.eup %3570 }
 0x764   :  { %893 = vrot.lane.b32.xlu0 %v3571_v41, %s3713_s4 }
 0x76b   :  { %v3573_v42 = vpop.eup %3572 }
 0x76c   :  { %920 = vrot.lane.b32.xlu1 %v3573_v42, %s3713_s4 }
 0x7d6   :  { %v894_v43 = vpop.permute.xlu0 %893 }
 0x7d7   :  { %v3953_v44 = vmul.f32 %v3567_v20, %v894_v43 }
 0x7d9   :  { %v1005_v45 = vrot.slane %v3953_v44, 4 }
 0x7db   :  { %1006 = vrot.lane.b32.xlu0 %v1005_v45, %s3714_s9 }
 0x7de   :  { %v921_v46 = vpop.permute.xlu1 %920 }
 0x7df   :  { %v3957_v47 = vmul.f32 %v3569_v26, %v921_v46 }
 0x7e1   :  { %v1084_v48 = vrot.slane %v3957_v47, 2 }
 0x7e3   :  { %1085 = vrot.lane.b32.xlu1 %v1084_v48, %s3714_s9 }
 0x84d   :  { %v1007_v49 = vpop.permute.xlu0 %1006 }
 0x84e   :  { %3235 = vmatmul.mubr.msk.f32.vlgmr.msra.gmra.mrb[6].mxu1 %vm140_vm2, %v1007_v49 }
 0x84f   :  { %3448 = vmatpush3.bf16.msra.mxu1 %v3783_v9  ;;  %3256 = vmatprep.mubr.msk.f32.mxu1 %vm3712_vm0, %v3711_v8 }
 0x850   :  { %3449 = vmatprep.subr.bf16.mxu1 %v3710_v3 }
 0x853   :  { %3451 = vmatpush3.bf16.msra.mxu1 %v3803_v16 }
 0x854   :  { %3458 = vmatprep.subr.bf16.mxu1 %v3710_v3 }
 0x855   :  { %v1086_v50 = vpop.permute.xlu1 %1085 }
 0x856   :  { %3246 = vmatmul.mubr.msk.f32.vlgmr.msra.gmra.mrb[10].mxu0 %vm140_vm2, %v1086_v50 }
 0x857   :  { %3454 = vmatpush3.bf16.msra.mxu0 %v3805_v17  ;;  %3267 = vmatprep.mubr.msk.f32.mxu0 %vm3712_vm0, %v3711_v8 }
 0x858   :  { %3455 = vmatprep.subr.bf16.mxu0 %v3710_v3 }
 0x85b   :  { %3457 = vmatpush3.bf16.msra.mxu0 %v3821_v21 }
 0x85c   :  { %3464 = vmatprep.subr.bf16.mxu0 %v3710_v3 }
 0x921   :  { %v1076_v51 = vpop.f32.mrb[6].mxu1 }
 0x922   :  { %v1081_v52 = vrot.slane %v1076_v51, 2  ;;  %v3236_v53 = vpop.f32.mrb[7].mxu1 }
 0x924   :  { %v1083_v55 = vadd.f32 %v1081_v52, %v3855_v30 }
 0x926   :  { %3574 = vtanh.f32 %v1083_v55  ;;  %v3027_v62 = vmul.f32 -1.442695, %v1083_v55 }
 0x929   :  { %v1155_v56 = vpop.f32.mrb[10].mxu0 }
 0x92a   :  { %v1159_v58 = vadd.f32 %v1155_v56, %v3862_v40  ;;  %v3247_v59 = vpop.f32.mrb[11].mxu0 }
 0x92c   :  { %3576 = vtanh.f32 %v1159_v58  ;;  %v3028_v63 = vmul.f32 -1.442695, %v1159_v58 }
 0x92d   :  { %3578 = vpow2.f32 %v3027_v62 }
 0x92e   :  { %3580 = vpow2.f32 %v3028_v63 }
 0x930   :  { %v3575_v60 = vpop.eup %3574 }
 0x931   :  { %1172 = vrot.lane.b32.xlu0 %v3575_v60, %s3713_s4 }
 0x936   :  { %v3577_v61 = vpop.eup %3576 }
 0x937   :  { %1199 = vrot.lane.b32.xlu1 %v3577_v61, %s3713_s4  ;;  %v3579_v0 = vpop.eup %3578 }
 0x938   :  { %v1163_v1 = vadd.f32 1.0, %v3579_v0  ;;  %v3581_v2 = vpop.eup %3580 }
 0x939   :  { %v1190_v30 = vadd.f32 1.0, %v3581_v2 }
 0x93a   :  { %3582 = vrcp.f32 %v1163_v1 }
 0x93b   :  { %3584 = vrcp.f32 %v1190_v30 }
 0x944   :  { %v3583_v5 = vpop.eup %3582 }
 0x945   :  { %v3585_v10 = vpop.eup %3584  ;;  %v1170_v14 = vmul.f32 %v3583_v5, %v1168_v13 }
 0x946   :  { %v1197_v20 = vmul.f32 %v3585_v10, %v1195_v19 }
 0x9a3   :  { %v1173_v40 = vpop.permute.xlu0 %1172 }
 0x9a4   :  { %v1175_v7 = vmul.f32 %v3583_v5, %v1173_v40 }
 0x9a6   :  { %1177 = vrot.lane.b32.xlu0 %v1175_v7, %s3714_s9 }
 0x9a9   :  { %v1200_v11 = vpop.permute.xlu1 %1199 }
 0x9aa   :  { %v1202_v12 = vmul.f32 %v3585_v10, %v1200_v11 }
 0x9ac   :  { %1204 = vrot.lane.b32.xlu1 %v1202_v12, %s3714_s9 }
 0xa18   :  { %v1178_v15 = vpop.permute.xlu0 %1177 }
 0xa19   :  { %v3982_v18 = vadd.f32 %v1178_v15, %v1170_v14 }
 0xa1b   :  { %3586 = vtanh.f32 %v3982_v18  ;;  %v1457_v0 = vrot.slane %v3982_v18, 6 }
 0xa1e   :  { %v1205_v22 = vpop.permute.xlu1 %1204 }
 0xa1f   :  { %v3986_v25 = vadd.f32 %v1205_v22, %v1197_v20 }
 0xa21   :  { %3588 = vtanh.f32 %v3986_v25 }
 0xa25   :  { %v3587_v26 = vpop.eup %3586 }
 0xa26   :  { %1183 = vrot.lane.b32.xlu0 %v3587_v26, %s3713_s4 }
 0xa2b   :  { %v3589_v27 = vpop.eup %3588 }
 0xa2c   :  { %1210 = vrot.lane.b32.xlu1 %v3589_v27, %s3713_s4 }
 0xa98   :  { %v1184_v28 = vpop.permute.xlu0 %1183 }
 0xa99   :  { %v3991_v29 = vmul.f32 %v3583_v5, %v1184_v28  ;;  %v1484_v5 = vrot.slane %v3986_v25, 2 }
 0xa9b   :  { %v1295_v31 = vrot.slane %v3991_v29, 6 }
 0xa9d   :  { %1296 = vrot.lane.b32.xlu0 %v1295_v31, %s3714_s9 }
 0xa9e   :  { %v1211_v33 = vpop.permute.xlu1 %1210 }
 0xa9f   :  { %v3995_v34 = vmul.f32 %v3585_v10, %v1211_v33 }
 0xaa1   :  { %1371 = vrot.lane.b32.xlu1 %v3995_v34, %s3714_s9 }
 0xb0f   :  { %v1297_v35 = vpop.permute.xlu0 %1296 }
 0xb10   :  { %3257 = vmatmul.mubr.msk.f32.vlgmr.msra.gmra.mrb[8].mxu1 %vm140_vm2, %v1297_v35 }
 0xb11   :  { %3460 = vmatpush3.bf16.msra.mxu1 %v3783_v9  ;;  %3278 = vmatprep.mubr.msk.f32.mxu1 %vm3712_vm0, %v3711_v8 }
 0xb12   :  { %3461 = vmatprep.subr.bf16.mxu1 %v3710_v3 }
 0xb13   :  { %v1372_v37 = vpop.permute.xlu1 %1371 }
 0xb14   :  { %3268 = vmatmul.mubr.msk.f32.vlgmr.msra.gmra.mrb[12].mxu0 %vm140_vm2, %v1372_v37 }
 0xb15   :  { %3463 = vmatpush3.bf16.msra.mxu1 %v3803_v16  ;;  %3466 = vmatpush3.bf16.msra.mxu0 %v3805_v17 }
 0xb16   :  { %3467 = vmatprep.subr.bf16.mxu0 %v3710_v3  ;;  %3289 = vmatprep.mubr.msk.f32.mxu0 %vm3712_vm0, %v3711_v8 }
 0xb17   :  { %3470 = vmatprep.subr.bf16.mxu1 %v3710_v3 }
 0xb19   :  { %3469 = vmatpush3.bf16.msra.mxu0 %v3821_v21 }
 0xb1a   :  { %3476 = vmatprep.subr.bf16.mxu0 %v3710_v3 }
 0xbe3   :  { %v1366_v38 = vpop.f32.mrb[8].mxu1 }
 0xbe4   :  { %v1370_v39 = vadd.f32 %v1366_v38, %v3860_v36  ;;  %v3258_v41 = vpop.f32.mrb[9].mxu1 }
 0xbe6   :  { %3590 = vtanh.f32 %v1370_v39  ;;  %v3031_v50 = vmul.f32 -1.442695, %v1370_v39 }
 0xbe7   :  { %v1441_v42 = vpop.f32.mrb[12].mxu0 }
 0xbe8   :  { %v1446_v43 = vrot.slane %v1441_v42, 2  ;;  %v3269_v45 = vpop.f32.mrb[13].mxu0 }
 0xbea   :  { %v1448_v46 = vadd.f32 %v1446_v43, %v3857_v32 }
 0xbec   :  { %3592 = vtanh.f32 %v1448_v46  ;;  %v3032_v51 = vmul.f32 -1.442695, %v1448_v46 }
 0xbed   :  { %3594 = vpow2.f32 %v3031_v50 }
 0xbee   :  { %3596 = vpow2.f32 %v3032_v51 }
 0xbf0   :  { %v3591_v48 = vpop.eup %3590 }
 0xbf1   :  { %1461 = vrot.lane.b32.xlu0 %v3591_v48, %s3713_s4 }
 0xbf6   :  { %v3593_v49 = vpop.eup %3592 }
 0xbf7   :  { %1488 = vrot.lane.b32.xlu1 %v3593_v49, %s3713_s4  ;;  %v3595_v52 = vpop.eup %3594 }
 0xbf8   :  { %v1452_v53 = vadd.f32 1.0, %v3595_v52  ;;  %v3597_v55 = vpop.eup %3596 }
 0xbf9   :  { %v1479_v56 = vadd.f32 1.0, %v3597_v55 }
 0xbfa   :  { %3598 = vrcp.f32 %v1452_v53 }
 0xbfb   :  { %3600 = vrcp.f32 %v1479_v56 }
 0xc04   :  { %v3599_v58 = vpop.eup %3598 }
 0xc05   :  { %v3601_v61 = vpop.eup %3600  ;;  %v1459_v1 = vmul.f32 %v3599_v58, %v1457_v0 }
 0xc06   :  { %v1486_v40 = vmul.f32 %v3601_v61, %v1484_v5 }
 0xc63   :  { %v1462_v59 = vpop.permute.xlu0 %1461 }
 0xc64   :  { %v1464_v60 = vmul.f32 %v3599_v58, %v1462_v59 }
 0xc66   :  { %1466 = vrot.lane.b32.xlu0 %v1464_v60, %s3714_s9 }
 0xc69   :  { %v1489_v62 = vpop.permute.xlu1 %1488 }
 0xc6a   :  { %v1491_v63 = vmul.f32 %v3601_v61, %v1489_v62 }
 0xc6c   :  { %1493 = vrot.lane.b32.xlu1 %v1491_v63, %s3714_s9 }
 0xcd8   :  { %v1467_v2 = vpop.permute.xlu0 %1466 }
 0xcd9   :  { %v4020_v30 = vadd.f32 %v1467_v2, %v1459_v1 }
 0xcdb   :  { %3602 = vtanh.f32 %v4020_v30  ;;  %v1749_v56 = vrot.slane %v4020_v30, 6 }
 0xcde   :  { %v1494_v7 = vpop.permute.xlu1 %1493 }
 0xcdf   :  { %v4024_v10 = vadd.f32 %v1494_v7, %v1486_v40 }
 0xce1   :  { %3604 = vtanh.f32 %v4024_v10 }
 0xce5   :  { %v3603_v11 = vpop.eup %3602 }
 0xce6   :  { %1472 = vrot.lane.b32.xlu0 %v3603_v11, %s3713_s4 }
 0xceb   :  { %v3605_v12 = vpop.eup %3604 }
 0xcec   :  { %1499 = vrot.lane.b32.xlu1 %v3605_v12, %s3713_s4 }
 0xd58   :  { %v1473_v13 = vpop.permute.xlu0 %1472 }
 0xd59   :  { %v4029_v14 = vmul.f32 %v3599_v58, %v1473_v13 }
 0xd5b   :  { %1584 = vrot.lane.b32.xlu0 %v4029_v14, %s3714_s9 }
 0xd5e   :  { %v1500_v15 = vpop.permute.xlu1 %1499 }
 0xd5f   :  { %v4033_v18 = vmul.f32 %v3601_v61, %v1500_v15  ;;  %v1776_v61 = vrot.slane %v4024_v10, 2 }
 0xd61   :  { %v1662_v19 = vrot.slane %v4033_v18, 6 }
 0xd63   :  { %1663 = vrot.lane.b32.xlu1 %v1662_v19, %s3714_s9 }
 0xdcd   :  { %v1585_v20 = vpop.permute.xlu0 %1584 }
 0xdce   :  { %3279 = vmatmul.mubr.msk.f32.vlgmr.msra.gmra.mrb[10].mxu1 %vm140_vm2, %v1585_v20 }
 0xdcf   :  { %3472 = vmatpush3.bf16.msra.mxu1 %v3783_v9  ;;  %3300 = vmatprep.mubr.msk.f32.mxu1 %vm3712_vm0, %v3711_v8 }
 0xdd0   :  { %3473 = vmatprep.subr.bf16.mxu1 %v3710_v3 }
 0xdd3   :  { %3475 = vmatpush3.bf16.msra.mxu1 %v3803_v16 }
 0xdd4   :  { %3482 = vmatprep.subr.bf16.mxu1 %v3710_v3 }
 0xdd5   :  { %v1664_v22 = vpop.permute.xlu1 %1663 }
 0xdd6   :  { %3290 = vmatmul.mubr.msk.f32.vlgmr.msra.gmra.mrb[14].mxu0 %vm140_vm2, %v1664_v22 }
 0xdd7   :  { %3478 = vmatpush3.bf16.msra.mxu0 %v3805_v17  ;;  %3311 = vmatprep.mubr.msk.f32.mxu0 %vm3712_vm0, %v3711_v8 }
 0xdd8   :  { %3479 = vmatprep.subr.bf16.mxu0 %v3710_v3 }
 0xddb   :  { %3481 = vmatpush3.bf16.msra.mxu0 %v3821_v21 }
 0xddc   :  { %3488 = vmatprep.subr.bf16.mxu0 %v3710_v3 }
 0xea1   :  { %v1654_v25 = vpop.f32.mrb[10].mxu1 }
 0xea2   :  { %v1659_v26 = vrot.slane %v1654_v25, 6  ;;  %v3280_v27 = vpop.f32.mrb[11].mxu1 }
 0xea4   :  { %v1661_v28 = vadd.f32 %v1659_v26, %v3860_v36 }
 0xea6   :  { %3606 = vtanh.f32 %v1661_v28  ;;  %v3035_v41 = vmul.f32 -1.442695, %v1661_v28 }
 0xea9   :  { %v1733_v31 = vpop.f32.mrb[14].mxu0 }
 0xeaa   :  { %v1738_v33 = vrot.slane %v1733_v31, 4  ;;  %v3291_v35 = vpop.f32.mrb[15].mxu0 }
 0xeac   :  { %v1740_v37 = vadd.f32 %v1738_v33, %v3857_v32 }
 0xeae   :  { %3608 = vtanh.f32 %v1740_v37  ;;  %v3036_v42 = vmul.f32 -1.442695, %v1740_v37 }
 0xeaf   :  { %3610 = vpow2.f32 %v3035_v41 }
 0xeb0   :  { %v3607_v38 = vpop.eup %3606  ;;  %3612 = vpow2.f32 %v3036_v42 }
 0xeb1   :  { %1753 = vrot.lane.b32.xlu0 %v3607_v38, %s3713_s4 }
 0xeb8   :  { %v3609_v39 = vpop.eup %3608 }
 0xeb9   :  { %1780 = vrot.lane.b32.xlu1 %v3609_v39, %s3713_s4  ;;  %v3611_v43 = vpop.eup %3610 }
 0xeba   :  { %v1744_v45 = vadd.f32 1.0, %v3611_v43  ;;  %v3613_v46 = vpop.eup %3612 }
 0xebb   :  { %v1771_v48 = vadd.f32 1.0, %v3613_v46 }
 0xebc   :  { %3614 = vrcp.f32 %v1744_v45 }
 0xebd   :  { %3616 = vrcp.f32 %v1771_v48 }
 0xec6   :  { %v3615_v49 = vpop.eup %3614 }
 0xec7   :  { %v3617_v52 = vpop.eup %3616  ;;  %v1751_v58 = vmul.f32 %v3615_v49, %v1749_v56 }
 0xec8   :  { %v1778_v62 = vmul.f32 %v3617_v52, %v1776_v61 }
 0xf23   :  { %v1754_v50 = vpop.permute.xlu0 %1753 }
 0xf24   :  { %v1756_v51 = vmul.f32 %v3615_v49, %v1754_v50 }
 0xf26   :  { %1758 = vrot.lane.b32.xlu0 %v1756_v51, %s3714_s9 }
 0xf2b   :  { %v1781_v53 = vpop.permute.xlu1 %1780 }
 0xf2c   :  { %v1783_v55 = vmul.f32 %v3617_v52, %v1781_v53 }
 0xf2e   :  { %1785 = vrot.lane.b32.xlu1 %v1783_v55, %s3714_s9 }
 0xf98   :  { %v1759_v59 = vpop.permute.xlu0 %1758 }
 0xf99   :  { %v4058_v60 = vadd.f32 %v1759_v59, %v1751_v58 }
 0xf9b   :  { %3618 = vtanh.f32 %v4058_v60  ;;  %v2042_v46 = vrot.slane %v4058_v60, 6 }
 0xfa0   :  { %v1786_v63 = vpop.permute.xlu1 %1785 }
 0xfa1   :  { %v4062_v0 = vadd.f32 %v1786_v63, %v1778_v62 }
 0xfa3   :  { %3620 = vtanh.f32 %v4062_v0  ;;  %v2069_v51 = vrot.slane %v4062_v0, 2 }
 0xfa5   :  { %v3619_v1 = vpop.eup %3618 }
 0xfa6   :  { %1764 = vrot.lane.b32.xlu0 %v3619_v1, %s3713_s4 }
 0xfad   :  { %v3621_v2 = vpop.eup %3620 }
 0xfae   :  { %1791 = vrot.lane.b32.xlu1 %v3621_v2, %s3713_s4 }
0x1018   :  { %v1765_v30 = vpop.permute.xlu0 %1764 }
0x1019   :  { %v4067_v5 = vmul.f32 %v3615_v49, %v1765_v30 }
0x101b   :  { %v1876_v40 = vrot.slane %v4067_v5, 2 }
0x101d   :  { %1877 = vrot.lane.b32.xlu0 %v1876_v40, %s3714_s9 }
0x1020   :  { %v1792_v7 = vpop.permute.xlu1 %1791 }
0x1021   :  { %v4071_v10 = vmul.f32 %v3617_v52, %v1792_v7 }
0x1023   :  { %v1955_v11 = vrot.slane %v4071_v10, 4 }
0x1025   :  { %1956 = vrot.lane.b32.xlu1 %v1955_v11, %s3714_s9 }
0x108f   :  { %v1878_v12 = vpop.permute.xlu0 %1877 }
0x1090   :  { %3301 = vmatmul.mubr.msk.f32.vlgmr.msra.gmra.mrb[12].mxu1 %vm140_vm2, %v1878_v12 }
0x1091   :  { %3484 = vmatpush3.bf16.msra.mxu1 %v3783_v9  ;;  %3322 = vmatprep.mubr.msk.f32.mxu1 %vm3712_vm0, %v3711_v8 }
0x1092   :  { %3485 = vmatprep.subr.bf16.mxu1 %v3710_v3 }
0x1095   :  { %3487 = vmatpush3.bf16.msra.mxu1 %v3803_v16 }
0x1096   :  { %3336 = vmatprep.subr.mxu1 %v3711_v8 }
0x1097   :  { %v1957_v13 = vpop.permute.xlu1 %1956 }
0x1098   :  { %3312 = vmatmul.mubr.msk.f32.vlgmr.msra.gmra.mrb[16].mxu0 %vm140_vm2, %v1957_v13 }
0x1099   :  { %3490 = vmatpush3.bf16.msra.mxu0 %v3805_v17  ;;  %3333 = vmatprep.mubr.msk.f32.mxu0 %vm3712_vm0, %v3711_v8 }
0x109a   :  { %3491 = vmatprep.subr.bf16.mxu0 %v3710_v3 }
0x109d   :  { %3493 = vmatpush3.bf16.msra.mxu0 %v3821_v21 }
0x109e   :  { %3341 = vmatprep.subr.mxu0 %v3711_v8 }
0x1163   :  { %v1947_v9 = vpop.f32.mrb[12].mxu1 }
0x1164   :  { %v1952_v15 = vrot.slane %v1947_v9, 4  ;;  %v3302_v19 = vpop.f32.mrb[13].mxu1 }
0x1166   :  { %v1954_v16 = vadd.f32 %v1952_v15, %v3860_v36 }
0x1168   :  { %3622 = vtanh.f32 %v1954_v16  ;;  %v3039_v21 = vmul.f32 -1.442695, %v1954_v16 }
0x116b   :  { %v2026_v20 = vpop.f32.mrb[16].mxu0 }
0x116c   :  { %v2031_v22 = vrot.slane %v2026_v20, 6  ;;  %v3313_v25 = vpop.f32.mrb[17].mxu0 }
0x116e   :  { %v2033_v17 = vadd.f32 %v2031_v22, %v3857_v32 }
0x1170   :  { %3624 = vtanh.f32 %v2033_v17  ;;  %v3040_v28 = vmul.f32 -1.442695, %v2033_v17  ;;  %v3715_v17 = vmov 1966171168  }
0x1171   :  { %3626 = vpow2.f32 %v3039_v21 }
0x1172   :  { %v3623_v26 = vpop.eup %3622  ;;  %3628 = vpow2.f32 %v3040_v28 }
0x1173   :  { %2046 = vrot.lane.b32.xlu0 %v3623_v26, %s3713_s4 }
0x117a   :  { %v3625_v27 = vpop.eup %3624 }
0x117b   :  { %2073 = vrot.lane.b32.xlu1 %v3625_v27, %s3713_s4  ;;  %v3627_v31 = vpop.eup %3626 }
0x117c   :  { %v2037_v33 = vadd.f32 1.0, %v3627_v31  ;;  %v3629_v35 = vpop.eup %3628 }
0x117d   :  { %v2064_v37 = vadd.f32 1.0, %v3629_v35 }
0x117e   :  { %3630 = vrcp.f32 %v2037_v33 }
0x117f   :  { %3632 = vrcp.f32 %v2064_v37 }
0x1188   :  { %v3631_v38 = vpop.eup %3630 }
0x1189   :  { %v3633_v42 = vpop.eup %3632  ;;  %v2044_v48 = vmul.f32 %v3631_v38, %v2042_v46  ;;  %v378_v46 = vcombine.high %v3881_v6, %v3881_v6 }
0x118a   :  { %v2071_v52 = vmul.f32 %v3633_v42, %v2069_v51 }
0x11e5   :  { %v2047_v39 = vpop.permute.xlu0 %2046 }
0x11e6   :  { %v2049_v41 = vmul.f32 %v3631_v38, %v2047_v39 }
0x11e8   :  { %2051 = vrot.lane.b32.xlu0 %v2049_v41, %s3714_s9 }
0x11ed   :  { %v2074_v43 = vpop.permute.xlu1 %2073 }
0x11ee   :  { %v2076_v45 = vmul.f32 %v3633_v42, %v2074_v43 }
0x11f0   :  { %2078 = vrot.lane.b32.xlu1 %v2076_v45, %s3714_s9 }
0x125a   :  { %v2052_v49 = vpop.permute.xlu0 %2051 }
0x125b   :  { %v4096_v50 = vadd.f32 %v2052_v49, %v2044_v48 }
0x125d   :  { %3634 = vtanh.f32 %v4096_v50 }
0x1262   :  { %v2079_v53 = vpop.permute.xlu1 %2078 }
0x1263   :  { %v4100_v55 = vadd.f32 %v2079_v53, %v2071_v52 }
0x1265   :  { %3636 = vtanh.f32 %v4100_v55  ;;  %v2359_v49 = vrot.slane %v4100_v55, 2 }
0x1267   :  { %v3635_v56 = vpop.eup %3634 }
0x1268   :  { %2057 = vrot.lane.b32.xlu0 %v3635_v56, %s3713_s4 }
0x126f   :  { %v3637_v58 = vpop.eup %3636 }
0x1270   :  { %2084 = vrot.lane.b32.xlu1 %v3637_v58, %s3713_s4 }
0x12da   :  { %v2058_v59 = vpop.permute.xlu0 %2057 }
0x12db   :  { %v4105_v60 = vmul.f32 %v3631_v38, %v2058_v59 }
0x12dd   :  { %v2169_v61 = vrot.slane %v4105_v60, 4 }
0x12df   :  { %2170 = vrot.lane.b32.xlu0 %v2169_v61, %s3714_s9 }
0x12e2   :  { %v2085_v62 = vpop.permute.xlu1 %2084 }
0x12e3   :  { %v4109_v63 = vmul.f32 %v3633_v42, %v2085_v62 }
0x12e5   :  { %v2248_v0 = vrot.slane %v4109_v63, 2 }
0x12e7   :  { %2249 = vrot.lane.b32.xlu1 %v2248_v0, %s3714_s9 }
0x1351   :  { %v2171_v1 = vpop.permute.xlu0 %2170 }
0x1352   :  { %3323 = vmatmul.mubr.msk.f32.vlgmr.msra.gmra.mrb[14].mxu1 %vm140_vm2, %v2171_v1  ;;  %v673_v1 = vcombine.high %v3919_v57, %v3919_v57 }
0x1353   :  { %3338 = vmatprep.mubr.msk.f32.mxu1 %vm3712_vm0, %v3711_v8 }
0x1359   :  { %v2250_v2 = vpop.permute.xlu1 %2249 }
0x135a   :  { %3334 = vmatmul.mubr.msk.f32.vlgmr.msra.gmra.mrb[18].mxu0 %vm140_vm2, %v2250_v2 }
0x135b   :  { %3343 = vmatprep.mubr.msk.f32.mxu0 %vm3712_vm0, %v3711_v8 }
0x1425   :  { %v2240_v30 = vpop.f32.mrb[14].mxu1 }
0x1426   :  { %v2245_v40 = vrot.slane %v2240_v30, 2  ;;  %v3324_v7 = vpop.f32.mrb[15].mxu1 }
0x1428   :  { %v2247_v11 = vadd.f32 %v2245_v40, %v3860_v36  ;;  %v339_v36 = vunpack.c.l.s4 %v3715_v17 }
0x142a   :  { %3638 = vtanh.f32 %v2247_v11  ;;  %v3043_v16 = vmul.f32 -1.442695, %v2247_v11  ;;  %v340_v27 = vunpack.c.0.s8 %v339_v36 }
0x142c   :  { %v4124_v21 = vsub.s32 %v340_v27, %v3845_v23 }
0x142d   :  { %v2319_v12 = vpop.f32.mrb[18].mxu0 }
0x142e   :  { %v2323_v13 = vadd.f32 %v2319_v12, %v3857_v32  ;;  %v3335_v9 = vpop.f32.mrb[19].mxu0  ;;  %v344_v28 = vrot.slane %v3877_v4, %v4124_v21  ;;  %v2332_v4 = vrot.slane %v4096_v50, 6  ;;  %v385_v51 = vrot.slane %v378_v46, %v4124_v21 }
0x142f   :  { %v638_v50 = vrot.slane %v3915_v54, %v4124_v21  ;;  %v680_v11 = vrot.slane %v673_v1, %v4124_v21  ;;  %v925_v12 = vcombine.high %v3953_v44, %v3953_v44  ;;  %v1215_v44 = vcombine.high %v3991_v29, %v3991_v29 }
0x1430   :  { %3640 = vtanh.f32 %v2323_v13  ;;  %v3044_v20 = vmul.f32 -1.442695, %v2323_v13  ;;  %v345_v37 = vcombine.high %v344_v28, %v344_v28  ;;  %v386_v58 = vcombine.high %v385_v51, %v385_v51 }
0x1431   :  { %3642 = vpow2.f32 %v3043_v16  ;;  %v352_v6 = vrot.slane %v344_v28, %v4124_v21  ;;  %v393_v55 = vrot.slane %v385_v51, %v4124_v21  ;;  %v639_v62 = vcombine.high %v638_v50, %v638_v50 }
0x1432   :  { %3644 = vpow2.f32 %v3044_v20  ;;  %v359_v23 = vrot.slane %v345_v37, %v4124_v21  ;;  %v400_v0 = vrot.slane %v386_v58, %v4124_v21  ;;  %v646_v2 = vrot.slane %v638_v50, %v4124_v21 }
0x1433   :  { %v363_v54 = vrot.slane %v352_v6, %v3848_v24  ;;  %v401_v30 = vcombine.high %v393_v55, %v393_v55  ;;  %v653_v7 = vrot.slane %v639_v62, %v4124_v21  ;;  %v681_v16 = vcombine.high %v680_v11, %v680_v11 }
0x1434   :  { %v3639_v15 = vpop.eup %3638  ;;  %v367_v42 = vrot.slane %v359_v23, %v3848_v24  ;;  %v402_v40 = vcombine.high %v400_v0, %v400_v0  ;;  %v654_v9 = vcombine.high %v646_v2, %v646_v2  ;;  %v932_v20 = vrot.slane %v925_v12, %v4124_v21 }
0x1435   :  { %2336 = vrot.lane.b32.xlu0 %v3639_v15, %s3713_s4  ;;  %v406_v57 = vrot.slane %v401_v30, %v3848_v24  ;;  %v688_v17 = vrot.slane %v680_v11, %v4124_v21 }
0x1436   :  { %v410_v15 = vrot.slane %v402_v40, %v3848_v24 }
0x1437   :  { %v699_v28 = vrot.slane %v688_v17, %v3848_v24  ;;  %v2135_v17 = vrot.slane %v4109_v63, %v4124_v21 }
0x143a   :  { %v3641_v19 = vpop.eup %3640 }
0x143b   :  { %2363 = vrot.lane.b32.xlu1 %v3641_v19, %s3713_s4  ;;  %v3643_v22 = vpop.eup %3642  ;;  %v655_v19 = vcombine.high %v653_v7, %v653_v7 }
0x143c   :  { %v2327_v25 = vadd.f32 1.0, %v3643_v22  ;;  %v3645_v26 = vpop.eup %3644  ;;  %v971_v22 = vrot.slane %v3957_v47, %v4124_v21  ;;  %v695_v47 = vrot.slane %v681_v16, %v4124_v21 }
0x143d   :  { %v2354_v32 = vadd.f32 1.0, %v3645_v26  ;;  %v663_v36 = vrot.slane %v655_v19, %v3848_v24  ;;  %v933_v26 = vcombine.high %v932_v20, %v932_v20 }
0x143e   :  { %3646 = vrcp.f32 %v2327_v25  ;;  %v659_v25 = vrot.slane %v654_v9, %v3848_v24  ;;  %v972_v27 = vcombine.high %v971_v22, %v971_v22  ;;  %v979_v29 = vrot.slane %v971_v22, %v4124_v21 }
0x143f   :  { %3648 = vrcp.f32 %v2354_v32  ;;  %v1222_v32 = vrot.slane %v1215_v44, %v4124_v21  ;;  %v703_v37 = vrot.slane %v695_v47, %v3848_v24 }
0x1440   :  { %v987_v23 = vcombine.high %v979_v29, %v979_v29 }
0x1442   :  { %v992_v51 = vrot.slane %v987_v23, %v3848_v24 }
0x1448   :  { %v4128_v31 = vpop.eup %3646 }
0x1449   :  { %v4132_v38 = vpop.eup %3648  ;;  %v2334_v43 = vmul.f32 %v4128_v31, %v2332_v4  ;;  %v1230_v4 = vrot.slane %v1222_v32, %v4124_v21 }
0x144a   :  { %v2361_v52 = vmul.f32 %v4132_v38, %v2359_v49 }
0x14a7   :  { %v2337_v33 = vpop.permute.xlu0 %2336 }
0x14a8   :  { %v2339_v35 = vmul.f32 %v4128_v31, %v2337_v33  ;;  %v940_v33 = vrot.slane %v932_v20, %v4124_v21 }
0x14aa   :  { %2341 = vrot.lane.b32.xlu0 %v2339_v35, %s3714_s9  ;;  %v1223_v35 = vcombine.high %v1222_v32, %v1222_v32  ;;  %v2136_v32 = vcombine.high %v2135_v17, %v2135_v17 }
0x14ac   :  { %v1237_v49 = vrot.slane %v1223_v35, %v4124_v21 }
0x14ad   :  { %v2364_v39 = vpop.permute.xlu1 %2363 }
0x14ae   :  { %v2366_v41 = vmul.f32 %v4132_v38, %v2364_v39  ;;  %v947_v39 = vrot.slane %v933_v26, %v4124_v21  ;;  %v1239_v58 = vcombine.high %v1237_v49, %v1237_v49 }
0x14b0   :  { %2368 = vrot.lane.b32.xlu1 %v2366_v41, %s3714_s9  ;;  %v986_v41 = vrot.slane %v972_v27, %v4124_v21  ;;  %v955_v46 = vrot.slane %v947_v39, %v3848_v24  ;;  %v2150_v39 = vrot.slane %v2136_v32, %v4124_v21 }
0x14b4   :  { %370 = vrot.lane.b32.xlu1 %v367_v42, %s3714_s9  ;;  %v951_v42 = vrot.slane %v940_v33, %v3848_v24 }
0x151c   :  { %v2342_v45 = vpop.permute.xlu0 %2341 }
0x151d   :  { %v2344_v48 = vadd.f32 %v2342_v45, %v2334_v43  ;;  %v1543_v43 = vcombine.high %v4033_v18, %v4033_v18  ;;  %v1263_v45 = vrot.slane %v3995_v34, %v4124_v21  ;;  %v1510_v18 = vrot.slane %v4029_v14, %v4124_v21 }
0x151e   :  { %v1247_v14 = vrot.slane %v1239_v58, %v3848_v24 }
0x151f   :  { %3650 = vtanh.f32 %v2344_v48  ;;  %v988_v48 = vcombine.high %v986_v41, %v986_v41  ;;  %v1271_v50 = vrot.slane %v1263_v45, %v4124_v21  ;;  %v1511_v55 = vcombine.high %v1510_v18, %v1510_v18 }
0x1520   :  { %v1518_v0 = vrot.slane %v1510_v18, %v4124_v21 }
0x1521   :  { %v996_v34 = vrot.slane %v988_v48, %v3848_v24  ;;  %v1282_v1 = vrot.slane %v1271_v50, %v3848_v24  ;;  %v1525_v7 = vrot.slane %v1511_v55, %v4124_v21 }
0x1522   :  { %v2369_v53 = vpop.permute.xlu1 %2368  ;;  %v1529_v12 = vrot.slane %v1518_v0, %v3848_v24 }
0x1523   :  { %v2371_v56 = vadd.f32 %v2369_v53, %v2361_v52  ;;  %v1238_v52 = vcombine.high %v1230_v4, %v1230_v4  ;;  %v1550_v53 = vrot.slane %v1543_v43, %v4124_v21  ;;  %v2152_v4 = vcombine.high %v2150_v39, %v2150_v39 }
0x1525   :  { %3652 = vtanh.f32 %v2371_v56  ;;  %v1264_v56 = vcombine.high %v1263_v45, %v1263_v45  ;;  %v1551_v6 = vcombine.high %v1550_v53, %v1550_v53  ;;  %v1558_v2 = vrot.slane %v1550_v53, %v4124_v21 }
0x1526   :  { %v371_v59 = vpop.permute.xlu1 %370  ;;  %v2160_v45 = vrot.slane %v2152_v4, %v3848_v24 }
0x1527   :  { %376 = vst.msk [vmem:[#allocation2 + $0x8] sm:$0x1] %vm374_vm3, %v371_v59  ;;  %v1243_v59 = vrot.slane %v1238_v52, %v3848_v24  ;;  %v1278_v62 = vrot.slane %v1264_v56, %v4124_v21 }
0x1529   :  { %v3651_v61 = vpop.eup %3650  ;;  %v1286_v40 = vrot.slane %v1278_v62, %v3848_v24 }
0x152a   :  { %2347 = vrot.lane.b32.xlu0 %v3651_v61, %s3713_s4  ;;  %v1802_v61 = vrot.slane %v4067_v5, %v4124_v21  ;;  %v1837_v5 = vcombine.high %v4071_v10, %v4071_v10  ;;  %v1533_v10 = vrot.slane %v1525_v7, %v3848_v24 }
0x152c   :  { %v1803_v30 = vcombine.high %v1802_v61, %v1802_v61  ;;  %v1810_v11 = vrot.slane %v1802_v61, %v4124_v21 }
0x152e   :  { %368 = vrot.lane.b32.xlu0 %v363_v54, %s3714_s9  ;;  %v1565_v54 = vrot.slane %v1551_v6, %v4124_v21  ;;  %v1817_v19 = vrot.slane %v1803_v30, %v4124_v21  ;;  %v1818_v16 = vcombine.high %v1810_v11, %v1810_v11 }
0x152f   :  { %v3653_v13 = vpop.eup %3652 }
0x1530   :  { %2374 = vrot.lane.b32.xlu1 %v3653_v13, %s3713_s4  ;;  %v1566_v13 = vcombine.high %v1558_v2, %v1558_v2  ;;  %v1567_v9 = vcombine.high %v1565_v54, %v1565_v54 }
0x1532   :  { %411 = vrot.lane.b32.xlu0 %v406_v57, %s3713_s4  ;;  %v1844_v57 = vrot.slane %v1837_v5, %v4124_v21  ;;  %v1571_v20 = vrot.slane %v1566_v13, %v3848_v24  ;;  %v1575_v22 = vrot.slane %v1567_v9, %v3848_v24 }
0x1534   :  { %413 = vrot.lane.b32.xlu1 %v410_v15, %s3713_s4  ;;  %v2089_v15 = vcombine.high %v4105_v60, %v4105_v60  ;;  %v1845_v44 = vcombine.high %v1844_v57, %v1844_v57  ;;  %v1819_v60 = vcombine.high %v1817_v19, %v1817_v19  ;;  %v1852_v26 = vrot.slane %v1844_v57, %v4124_v21 }
0x1536   :  { %664 = vrot.lane.b32.xlu0 %v659_v25, %s3714_s9  ;;  %v2096_v25 = vrot.slane %v2089_v15, %v4124_v21  ;;  %v1827_v47 = vrot.slane %v1819_v60, %v3848_v24  ;;  %v1859_v29 = vrot.slane %v1845_v44, %v4124_v21  ;;  %v1863_v63 = vrot.slane %v1852_v26, %v3848_v24 }
0x1538   :  { %666 = vrot.lane.b32.xlu1 %v663_v36, %s3714_s9  ;;  %v1823_v36 = vrot.slane %v1818_v16, %v3848_v24  ;;  %v2097_v27 = vcombine.high %v2096_v25, %v2096_v25  ;;  %v2104_v33 = vrot.slane %v2096_v25, %v4124_v21  ;;  %v1867_v35 = vrot.slane %v1859_v29, %v3848_v24 }
0x153a   :  { %704 = vrot.lane.b32.xlu0 %v699_v28, %s3713_s4  ;;  %v2143_v28 = vrot.slane %v2135_v17, %v4124_v21  ;;  %v2115_v23 = vrot.slane %v2104_v33, %v3848_v24 }
0x153c   :  { %706 = vrot.lane.b32.xlu1 %v703_v37, %s3713_s4  ;;  %v2111_v37 = vrot.slane %v2097_v27, %v4124_v21  ;;  %v2151_v41 = vcombine.high %v2143_v28, %v2143_v28 }
0x153e   :  { %956 = vrot.lane.b32.xlu0 %v951_v42, %s3714_s9  ;;  %v2119_v42 = vrot.slane %v2111_v37, %v3848_v24  ;;  %v2156_v43 = vrot.slane %v2151_v41, %v3848_v24 }
0x1540   :  { %958 = vrot.lane.b32.xlu1 %v955_v46, %s3714_s9 }
0x1542   :  { %997 = vrot.lane.b32.xlu0 %v992_v51, %s3713_s4 }
0x1544   :  { %999 = vrot.lane.b32.xlu1 %v996_v34, %s3713_s4 }
0x1546   :  { %1248 = vrot.lane.b32.xlu0 %v1243_v59, %s3714_s9 }
0x1548   :  { %1250 = vrot.lane.b32.xlu1 %v1247_v14, %s3714_s9 }
0x154a   :  { %1287 = vrot.lane.b32.xlu0 %v1282_v1, %s3713_s4 }
0x154c   :  { %1289 = vrot.lane.b32.xlu1 %v1286_v40, %s3713_s4 }
0x154e   :  { %1534 = vrot.lane.b32.xlu0 %v1529_v12, %s3714_s9 }
0x1550   :  { %1536 = vrot.lane.b32.xlu1 %v1533_v10, %s3714_s9 }
0x1552   :  { %1576 = vrot.lane.b32.xlu0 %v1571_v20, %s3713_s4 }
0x1554   :  { %1578 = vrot.lane.b32.xlu1 %v1575_v22, %s3713_s4 }
0x1556   :  { %1828 = vrot.lane.b32.xlu0 %v1823_v36, %s3714_s9 }
0x1558   :  { %1830 = vrot.lane.b32.xlu1 %v1827_v47, %s3714_s9 }
0x155a   :  { %1868 = vrot.lane.b32.xlu0 %v1863_v63, %s3713_s4 }
0x155c   :  { %1870 = vrot.lane.b32.xlu1 %v1867_v35, %s3713_s4 }
0x155e   :  { %2120 = vrot.lane.b32.xlu0 %v2115_v23, %s3714_s9 }
0x1560   :  { %2122 = vrot.lane.b32.xlu1 %v2119_v42, %s3714_s9 }
0x1562   :  { %2161 = vrot.lane.b32.xlu0 %v2156_v43, %s3713_s4 }
0x1564   :  { %2163 = vrot.lane.b32.xlu1 %v2160_v45, %s3713_s4 }
0x159c   :  { %v2348_v46 = vpop.permute.xlu0 %2347 }
0x159d   :  { %v2350_v48 = vmul.f32 %v4128_v31, %v2348_v46 }
0x159f   :  { %v2379_v49 = vcombine.high %v2350_v48, %v2350_v48  ;;  %2459 = vrot.lane.b32.xlu0 %v2350_v48, %s3714_s9 }
0x15a0   :  { %v369_v51 = vpop.permute.xlu0 %368 }
0x15a1   :  { %v2386_v52 = vrot.slane %v2379_v49, %v4124_v21  ;;  %375 = vst.msk [vmem:[#allocation2] sm:$0x1] %vm374_vm3, %v369_v51 }
0x15a2   :  { %v2375_v53 = vpop.permute.xlu1 %2374 }
0x15a3   :  { %2464 = vrot.lane.b32.xlu0 %v2350_v48, %s3713_s4  ;;  %v2377_v56 = vmul.f32 %v4132_v38, %v2375_v53  ;;  %v2394_v18 = vrot.slane %v2386_v52, %v4124_v21  ;;  %v2387_v34 = vcombine.high %v2386_v52, %v2386_v52 }
0x15a4   :  { %v412_v58 = vpop.permute.xlu0 %411 }
0x15a5   :  { %v2427_v31 = vrot.slane %v2377_v56, %v4124_v21  ;;  %418 = vst.msk [vmem:[#allocation2 + $0x7] sm:$0x1] %vm417_vm4, %v412_v58  ;;  %2469 = vrot.lane.b32.xlu1 %v2377_v56, %s3714_s9  ;;  %v2402_v50 = vcombine.high %v2394_v18, %v2394_v18  ;;  %v2401_v59 = vrot.slane %v2387_v34, %v4124_v21 }
0x15a6   :  { %v414_v6 = vpop.permute.xlu1 %413 }
0x15a7   :  { %v2428_v55 = vcombine.high %v2427_v31, %v2427_v31  ;;  %419 = vst.msk [vmem:[#allocation2 + $0xf] sm:$0x1] %vm417_vm4, %v414_v6  ;;  %v2407_v61 = vrot.slane %v2402_v50, %v3848_v24  ;;  %v2435_v38 = vrot.slane %v2427_v31, %v4124_v21  ;;  %v2403_v14 = vcombine.high %v2401_v59, %v2401_v59 }
0x15a8   :  { %v665_v62 = vpop.permute.xlu0 %664 }
0x15a9   :  { %670 = vst.msk [vmem:[#allocation2 + $0x1] sm:$0x1] %vm374_vm3, %v665_v62  ;;  %2412 = vrot.lane.b32.xlu0 %v2407_v61, %s3714_s9  ;;  %2473 = vrot.lane.b32.xlu1 %v2377_v56, %s3713_s4  ;;  %v2446_v0 = vrot.slane %v2435_v38, %v3848_v24  ;;  %v2411_v2 = vrot.slane %v2403_v14, %v3848_v24  ;;  %v2825_v38 = vld [vmem:[%s4402_s5] sm:$0xff]  ;;  %v2826_v14 = vld [vmem:[%s4402_s5 + $0x8] sm:$0xff] }
0x15aa   :  { %v667_v1 = vpop.permute.xlu1 %666  ;;  %v2442_v54 = vrot.slane %v2428_v55, %v4124_v21 }
0x15ab   :  { %671 = vst.msk [vmem:[#allocation2 + $0x9] sm:$0x1] %vm374_vm3, %v667_v1 }
0x15ac   :  { %v705_v30 = vpop.permute.xlu0 %704  ;;  %v2450_v40 = vrot.slane %v2442_v54, %v3848_v24  ;;  %v2828_v54 = vld [vmem:[%s4402_s5 + $0x18] sm:$0xff] }
0x15ad   :  { %710 = vst.msk [vmem:[#allocation2 + $0x6] sm:$0x1] %vm417_vm4, %v705_v30  ;;  %2451 = vrot.lane.b32.xlu0 %v2446_v0, %s3713_s4  ;;  %2414 = vrot.lane.b32.xlu1 %v2411_v2, %s3714_s9  ;;  %v3495_v0 = vpack.c.bf16 %v2826_v14, %v2825_v38  ;;  %v2827_v2 = vld [vmem:[%s4402_s5 + $0x10] sm:$0xff] }
0x15ae   :  { %v707_v5 = vpop.permute.xlu1 %706 }
0x15af   :  { %711 = vst.msk [vmem:[#allocation2 + $0xe] sm:$0x1] %vm417_vm4, %v707_v5  ;;  %v3498_v5 = vpack.c.bf16 %v2828_v54, %v2827_v2 }
0x15b0   :  { %v957_v7 = vpop.permute.xlu0 %956 }
0x15b1   :  { %962 = vst.msk [vmem:[#allocation2 + $0x2] sm:$0x1] %vm374_vm3, %v957_v7  ;;  %2453 = vrot.lane.b32.xlu1 %v2450_v40, %s3713_s4  ;;  %v2829_v7 = vld [vmem:[%s4402_s5 + $0x20] sm:$0xff] }
0x15b2   :  { %v959_v11 = vpop.permute.xlu1 %958 }
0x15b3   :  { %963 = vst.msk [vmem:[#allocation2 + $0xa] sm:$0x1] %vm374_vm3, %v959_v11  ;;  %v2830_v11 = vld [vmem:[%s4402_s5 + $0x28] sm:$0xff] }
0x15b4   :  { %v998_v12 = vpop.permute.xlu0 %997 }
0x15b5   :  { %1003 = vst.msk [vmem:[#allocation2 + $0x5] sm:$0x1] %vm417_vm4, %v998_v12  ;;  %v3501_v12 = vpack.c.bf16 %v2830_v11, %v2829_v7 }
0x15b6   :  { %v1000_v13 = vpop.permute.xlu1 %999 }
0x15b7   :  { %1004 = vst.msk [vmem:[#allocation2 + $0xd] sm:$0x1] %vm417_vm4, %v1000_v13  ;;  %v2831_v13 = vld [vmem:[%s4402_s5 + $0x30] sm:$0xff] }
0x15b8   :  { %v1249_v9 = vpop.permute.xlu0 %1248 }
0x15b9   :  { %1254 = vst.msk [vmem:[#allocation2 + $0x3] sm:$0x1] %vm374_vm3, %v1249_v9  ;;  %v2832_v9 = vld [vmem:[%s4402_s5 + $0x38] sm:$0xff]  ;;  %s3716_s5 = smov [#allocation6]  }
0x15ba   :  { %v1251_v57 = vpop.permute.xlu1 %1250  ;;  %s3001_s25 = sshll.u32 %s3716_s5, 4  ;;  %s3002_s25 = int_to_ptr.vmem [resolvable:$true] %s3001_s25 }
0x15bb   :  { %1255 = vst.msk [vmem:[#allocation2 + $0xb] sm:$0x1] %vm374_vm3, %v1251_v57  ;;  %v3504_v57 = vpack.c.bf16 %v2832_v9, %v2831_v13  ;;  %s3662_s2 = scalar_lea.vmem %s3002_s25, 32  ;;  %p3667_p1 = scmp.lt.s32.totalorder %s3002_s25, %s3002_s25 }
0x15bc   :  { %v1288_v24 = vpop.permute.xlu0 %1287  ;;  %p3663_p0 = scmp.ne.s32.totalorder %s3002_s25, %s3662_s2  ;;  %p3668_p2 = scmp.lt.s32.totalorder %s3662_s2, %s3662_s2 }
0x15bd   :  { %1293 = vst.msk [vmem:[#allocation2 + $0x4] sm:$0x1] %vm417_vm4, %v1288_v24 }
0x15be   :  { %v1290_v15 = vpop.permute.xlu1 %1289  ;;  %p3669_p3 = por %p3668_p2, %p3667_p1 }
0x15bf   :  { %1294 = vst.msk [vmem:[#allocation2 + $0xc] sm:$0x1] %vm417_vm4, %v1290_v15 }
0x15c0   :  { %v1535_v10 = vpop.permute.xlu0 %1534  ;;  %p3670_p4 = pnand %p3669_p3, %p3663_p0 }
0x15c1   :  { %1540 = vst.msk [vmem:[#allocation2 + $0x4] sm:$0x1] %vm374_vm3, %v1535_v10 }
0x15c2   :  { %v1537_v19 = vpop.permute.xlu1 %1536 }
0x15c3   :  { %1541 = vst.msk [vmem:[#allocation2 + $0xc] sm:$0x1] %vm374_vm3, %v1537_v19 }
0x15c4   :  { %v1577_v16 = vpop.permute.xlu0 %1576 }
0x15c5   :  { %1582 = vst.msk [vmem:[#allocation2 + $0x3] sm:$0x1] %vm417_vm4, %v1577_v16 }
0x15c6   :  { %v1579_v20 = vpop.permute.xlu1 %1578 }
0x15c7   :  { %1583 = vst.msk [vmem:[#allocation2 + $0xb] sm:$0x1] %vm417_vm4, %v1579_v20 }
0x15c8   :  { %v1829_v22 = vpop.permute.xlu0 %1828 }
0x15c9   :  { %1834 = vst.msk [vmem:[#allocation2 + $0x5] sm:$0x1] %vm374_vm3, %v1829_v22 }
0x15ca   :  { %v1831_v44 = vpop.permute.xlu1 %1830 }
0x15cb   :  { %1835 = vst.msk [vmem:[#allocation2 + $0xd] sm:$0x1] %vm374_vm3, %v1831_v44 }
0x15cc   :  { %v1869_v25 = vpop.permute.xlu0 %1868 }
0x15cd   :  { %1874 = vst.msk [vmem:[#allocation2 + $0x2] sm:$0x1] %vm417_vm4, %v1869_v25 }
0x15ce   :  { %v1871_v17 = vpop.permute.xlu1 %1870 }
0x15cf   :  { %1875 = vst.msk [vmem:[#allocation2 + $0xa] sm:$0x1] %vm417_vm4, %v1871_v17 }
0x15d0   :  { %v2121_v60 = vpop.permute.xlu0 %2120 }
0x15d1   :  { %2126 = vst.msk [vmem:[#allocation2 + $0x6] sm:$0x1] %vm374_vm3, %v2121_v60 }
0x15d2   :  { %v2123_v36 = vpop.permute.xlu1 %2122 }
0x15d3   :  { %2127 = vst.msk [vmem:[#allocation2 + $0xe] sm:$0x1] %vm374_vm3, %v2123_v36 }
0x15d4   :  { %v2162_v26 = vpop.permute.xlu0 %2161 }
0x15d5   :  { %2167 = vst.msk [vmem:[#allocation2 + $0x1] sm:$0x1] %vm417_vm4, %v2162_v26 }
0x15d6   :  { %v2164_v27 = vpop.permute.xlu1 %2163 }
0x15d7   :  { %2168 = vst.msk [vmem:[#allocation2 + $0x9] sm:$0x1] %vm417_vm4, %v2164_v27 }
0x1611   :  { %v2460_v32 = vpop.permute.xlu0 %2459 }
0x1612   :  { %2463 = vst.msk [vmem:[#allocation3 - $0x6] sm:$0x40] %vm2462_vm5, %v2460_v32 }
0x1615   :  { %v2465_v47 = vpop.permute.xlu0 %2464 }
0x1616   :  { %2468 = vst.msk [vmem:[#allocation3 - $0x7] sm:$0x80] %vm2467_vm6, %v2465_v47 }
0x1617   :  { %v2470_v29 = vpop.permute.xlu1 %2469 }
0x1618   :  { %2472 = vst.msk [vmem:[#allocation3 + $0x1] sm:$0x1] %vm374_vm3, %v2470_v29 }
0x161b   :  { %v2413_v28 = vpop.permute.xlu0 %2412  ;;  %v2474_v63 = vpop.permute.xlu1 %2473 }
0x161c   :  { %2418 = vst.msk [vmem:[#allocation2 + $0x7] sm:$0x1] %vm374_vm3, %v2413_v28 }
0x161d   :  { %2477 = vst.msk [vmem:[#allocation3] sm:$0x2] %vm2476_vm7, %v2474_v63 }
0x161f   :  { %v2452_v33 = vpop.permute.xlu0 %2451  ;;  %v2415_v35 = vpop.permute.xlu1 %2414 }
0x1620   :  { %2457 = vst.msk [vmem:[#allocation2] sm:$0x1] %vm417_vm4, %v2452_v33 }
0x1621   :  { %2419 = vst.msk [vmem:[#allocation2 + $0xf] sm:$0x1] %vm374_vm3, %v2415_v35 }
0x1623   :  { %v2454_v37 = vpop.permute.xlu1 %2453 }
0x1624   :  { %2458 = vst.msk [vmem:[#allocation2 + $0x8] sm:$0x1] %vm417_vm4, %v2454_v37  ;;  %v3045_v39 = vld.sshfl [vmem:[#allocation3] sm:$0x11 pattern:$0x75316420] }
0x1625   :  { %v2496_v23 = vrot.slane %v3045_v39, %v4124_v21  ;;  %v2489_v42 = vcombine.high %v3045_v39, %v3045_v39 }
0x1627   :  { %v2478_v41 = vld [vmem:[#allocation2] sm:$0xff]  ;;  %v2503_v43 = vrot.slane %v2489_v42, %v4124_v21 }
0x1628   :  { %3337 = vmatpush3.xpose.msk.msra.mxu1 %vm2504_vm8, %v2478_v41 }
0x1629   :  { %3346 = vmatprep.subr.mxu1 %v3711_v8 }
0x162b   :  { %3339 = vmatmul.mubr.msk.f32.vlgmr.msra.gmra.mrb[16].mxu1 %vm2504_vm8, %v2496_v23  ;;  %v2479_v4 = vld [vmem:[#allocation2 + $0x8] sm:$0xff] }
0x162c   :  { %3347 = vmatpush3.msra.mxu1 %v2478_v41  ;;  %3342 = vmatpush3.xpose.msk.msra.mxu0 %vm2504_vm8, %v2479_v4 }
0x162d   :  { %3351 = vmatprep.subr.mxu0 %v3711_v8  ;;  %3348 = vmatprep.mubr.msk.f32.mxu1 %vm3712_vm0, %v3711_v8 }
0x162e   :  { %3494 = vmatprep.subr.bf16.mxu1 %v3710_v3 }
0x162f   :  { %3344 = vmatmul.mubr.msk.f32.vlgmr.msra.gmra.mrb[20].mxu0 %vm2504_vm8, %v2503_v43 }
0x1630   :  { %3352 = vmatpush3.msra.mxu0 %v2479_v4  ;;  %3353 = vmatprep.mubr.msk.f32.mxu0 %vm3712_vm0, %v3711_v8 }
0x1631   :  { %3506 = vmatprep.subr.bf16.mxu0 %v3710_v3 }
0x16fe   :  { %v2576_v45 = vpop.f32.mrb[16].mxu1 }
0x16ff   :  { %v3340_v46 = vpop.f32.mrb[17].mxu1  ;;  %v2656_v21 = vsel %vm2655_vm9, %v2576_v45, -inf }
0x1700   :  { %2657 = vmax.xlane.f32.xlu0 %v2656_v21 }
0x1702   :  { %v2651_v48 = vpop.f32.mrb[20].mxu0 }
0x1703   :  { %v3345_v49 = vpop.f32.mrb[21].mxu0  ;;  %v2659_v51 = vsel %vm2655_vm9, %v2651_v48, -inf }
0x1704   :  { %2660 = vmax.xlane.f32.xlu1 %v2659_v51 }
0x178d   :  { %v2658_v52 = vpop.xlane.xlu0 %2657 }
0x178e   :  { %v2662_v53 = vsub.f32 %v2576_v45, %v2658_v52 }
0x1790   :  { %v2664_v56 = vmul.f32 1.442695, %v2662_v53 }
0x1791   :  { %v2661_v18 = vpop.xlane.xlu1 %2660 }
0x1792   :  { %3654 = vpow2.f32 %v2664_v56  ;;  %v2663_v34 = vsub.f32 %v2651_v48, %v2661_v18 }
0x1794   :  { %v2666_v58 = vmul.f32 1.442695, %v2663_v34 }
0x1796   :  { %3656 = vpow2.f32 %v2666_v58 }
0x179c   :  { %v3655_v31 = vpop.eup %3654 }
0x179d   :  { %v2668_v50 = vsel %vm2655_vm9, %v3655_v31, 0.0 }
0x179e   :  { %2669 = vadd.xlane.f32.xlu0 %v2668_v50 }
0x17a0   :  { %v3657_v59 = vpop.eup %3656 }
0x17a1   :  { %v2671_v6 = vsel %vm2655_vm9, %v3657_v59, 0.0 }
0x17a2   :  { %2672 = vadd.xlane.f32.xlu0 %v2671_v6 }
0x182b   :  { %v2670_v55 = vpop.xlane.xlu0 %2669 }
0x182c   :  { %3658 = vrcp.f32 %v2670_v55 }
0x182f   :  { %v2673_v61 = vpop.xlane.xlu0 %2672 }
0x1830   :  { %3660 = vrcp.f32 %v2673_v61 }
0x1836   :  { %v3659_v62 = vpop.eup %3658 }
0x1837   :  { %v2676_v1 = vmul.f32 %v3659_v62, %v3655_v31 }
0x1839   :  { %2982 = vst.msk [vmem:[#allocation6] sm:$0x1] %vm2655_vm9, %v2676_v1  ;;  %3349 = vmatmul.mubr.msk.f32.vlgmr.msra.gmra.mrb[18].mxu1 %vm2678_vm10, %v2676_v1 }
0x183a   :  { %v3661_v30 = vpop.eup %3660  ;;  %3496 = vmatpush3.bf16.msra.mxu1 %v3495_v0  ;;  %3372 = vmatprep.mubr.msk.f32.mxu1 %vm3712_vm0, %v3711_v8 }
0x183b   :  { %v2677_v40 = vmul.f32 %v3661_v30, %v3657_v59  ;;  %3497 = vmatprep.subr.bf16.mxu1 %v3710_v3 }
0x183d   :  { %2984 = vst.msk [vmem:[#allocation6 + $0x1] sm:$0x1] %vm2655_vm9, %v2677_v40  ;;  %3354 = vmatmul.mubr.msk.f32.vlgmr.msra.gmra.mrb[22].mxu0 %vm2678_vm10, %v2677_v40 }
0x183e   :  { %3499 = vmatpush3.bf16.msra.mxu1 %v3498_v5  ;;  %3508 = vmatpush3.bf16.msra.mxu0 %v3495_v0 }
0x183f   :  { %3500 = vmatprep.subr.bf16.mxu1 %v3710_v3  ;;  %3509 = vmatprep.subr.bf16.mxu0 %v3710_v3 }
0x1840   :  { %3391 = vmatprep.mubr.msk.f32.mxu0 %vm3712_vm0, %v3711_v8 }
0x1842   :  { %3502 = vmatpush3.bf16.msra.mxu1 %v3501_v12  ;;  %3511 = vmatpush3.bf16.msra.mxu0 %v3498_v5 }
0x1843   :  { %3503 = vmatprep.subr.bf16.mxu1 %v3710_v3  ;;  %3512 = vmatprep.subr.bf16.mxu0 %v3710_v3 }
0x1846   :  { %3505 = vmatpush3.bf16.msra.mxu1 %v3504_v57  ;;  %3514 = vmatpush3.bf16.msra.mxu0 %v3501_v12 }
0x1847   :  { %3515 = vmatprep.subr.bf16.mxu0 %v3710_v3 }
0x184a   :  { %3517 = vmatpush3.bf16.msra.mxu0 %v3504_v57 }
0x190c   :  { %v2748_v24 = vpop.f32.mrb[18].mxu1 }
0x190d   :  { %v3350_v15 = vpop.f32.mrb[19].mxu1  ;;  %3373 = vmatmul.mubr.msk.f32.vlgmr.msra.gmra.mrb[20].mxu1 %vm2504_vm8, %v2748_v24 }
0x1910   :  { %v2821_v10 = vpop.f32.mrb[22].mxu0 }
0x1911   :  { %v3355_v19 = vpop.f32.mrb[23].mxu0  ;;  %3392 = vmatmul.mubr.msk.f32.vlgmr.msra.gmra.mrb[24].mxu0 %vm2504_vm8, %v2821_v10 }
0x1912   :  { %3673 = shalt.err (!%p3670_p4)
}
0x1913   :  { %s3674_s28 = scalar_lea.hbm %s4405_s8, 32 }
0x1914   :  { %p3675_p5 = scmp.ne.s32.totalorder %s4405_s8, %s3674_s28  ;;  %p3678_p6 = scmp.lt.u32.totalorder %s3674_s28, %s4405_s8 }
0x1916   :  { %p3680_p7 = pnand %p3678_p6, %p3675_p5 }
0x1918   :  { %3683 = shalt.err (!%p3680_p7)
}
0x1919   :  { %3004 = dma.vmem_to_hbm [thread:$0]  %s3002_s25, 32, %s4405_s8, [#allocation7]   ;;  %v2833_v3 = vld [vmem:[%s4403_s6] sm:$0x1]  ;;  %vm2980_vm11 = vcmask 24576  }
0x191a   :  { %s3717_s12 = smov [#allocation4]  }
0x191b   :  { %s2991_s13 = sshll.u32 %s3717_s12, 4  ;;  %s2992_s13 = int_to_ptr.vmem [resolvable:$true] %s2991_s13 }
0x191c   :  { %s3684_s14 = scalar_lea.vmem %s2992_s13, 32  ;;  %p3689_p9 = scmp.lt.s32.totalorder %s2992_s13, %s2992_s13 }
0x191d   :  { %p3685_p8 = scmp.ne.s32.totalorder %s2992_s13, %s3684_s14  ;;  %p3690_p10 = scmp.lt.s32.totalorder %s3684_s14, %s3684_s14 }
0x191f   :  { %p3691_p11 = por %p3690_p10, %p3689_p9 }
0x1921   :  { %p3692_p12 = pnand %p3691_p11, %p3685_p8 }
0x19e0   :  { %v2903_v8 = vpop.f32.mrb[20].mxu1 }
0x19e1   :  { %v2904_v16 = vadd.f32 %v2903_v8, %v2833_v3  ;;  %v3374_v20 = vpop.f32.mrb[21].mxu1 }
0x19e3   :  { %2981 = vst.msk [vmem:[#allocation4] sm:$0x1] %vm2980_vm11, %v2904_v16 }
0x19e4   :  { %v2976_v22 = vpop.f32.mrb[24].mxu0 }
0x19e5   :  { %v2977_v44 = vadd.f32 %v2976_v22, %v2833_v3  ;;  %v3393_v25 = vpop.f32.mrb[25].mxu0 }
0x19e7   :  { %2983 = vst.msk [vmem:[#allocation4 + $0x1] sm:$0x1] %vm2980_vm11, %v2977_v44 }
0x19e8   :  { %3695 = shalt.err (!%p3692_p12)
}
0x19e9   :  { %s3696_s15 = scalar_lea.hbm %s4404_s7, 32 }
0x19ea   :  { %p3697_p13 = scmp.ne.s32.totalorder %s4404_s7, %s3696_s15  ;;  %p3700_p0 = scmp.lt.u32.totalorder %s3696_s15, %s4404_s7 }
0x19ec   :  { %p3702_p1 = pnand %p3700_p0, %p3697_p13 }
0x19ee   :  { %3705 = shalt.err (!%p3702_p1)
}
0x19ef   :  { %2994 = dma.vmem_to_hbm [thread:$0]  %s2992_s13, 32, %s4404_s7, [#allocation5]  }
0x19f0   :  { %3706 = dma.done.wait [#allocation5], 32  }
0x19f1   :  { %3707 = vsyncadd [#allocation5], 4294967264 }
0x19f2   :  { %3708 = dma.done.wait [#allocation7], 32  }
0x19f3   :  { %3709 = vsyncadd [#allocation7], 4294967264 }
0x19f4   :  { %3011 = vsyncpa [#allocation5], 1 }
0x19f5   :  { %3012 = vsyncpa [#allocation7], 1 }

</bundles_post_ra>
